<compile_context>
chip_gen: v6e
topology: v6e:2x2x1
jax: 0.10.0
libtpu: 0.0.40
codegen_flags: <defaults>
</compile_context>

<pallas_src>
import functools

import jax
import jax.numpy as jnp
from jax.experimental import pallas as pl
from jax.experimental.pallas import tpu as pltpu


def _head_kernel(x_ref, w_ref, b_ref, o_ref, *, num_sub_heads, output_k):
    """Single grid step.

    x_ref: (B, D)      compute dtype (bf16)
    w_ref: (D, H*K)    compute dtype (bf16), sub-heads folded head-major on lanes
    b_ref: (1, H*K)    f32
    o_ref: (H, B, K)   output dtype
    """
    # One fused matmul for all sub-heads, f32 accumulation on the MXU.
    logits = jnp.dot(x_ref[...], w_ref[...], preferred_element_type=jnp.float32)
    logits = logits + b_ref[...]                       # (B, H*K) f32

    # Per-sub-head softmax over its K logits (== PyTorch Softmax(dim=1)).
    for h in range(num_sub_heads):                     # static unroll, H is tiny
        lo = logits[:, h * output_k:(h + 1) * output_k]  # (B, K) static lane slice
        m = jnp.max(lo, axis=-1, keepdims=True)
        e = jnp.exp(lo - m)
        s = jnp.sum(e, axis=-1, keepdims=True)
        o_ref[h] = (e / s).astype(o_ref.dtype)


def cluster_net6c_head(x, w_stacked, b_stacked, *, compute_dtype=jnp.bfloat16):
    """ClusterNet6cHead forward.

    x:          (B, D) flattened trunk features (D = num_features * sp * sp)
    w_stacked:  (H, D, K)  per-sub-head Linear weights (x @ W[h] layout)
    b_stacked:  (H, 1, K)  per-sub-head biases
    Returns:    (H, B, K)  stacked softmax outputs; out[h] == head h's (B, K)
                result (the PyTorch module returns these as a Python list).
    """
    B, D = x.shape
    H, D2, K = w_stacked.shape
    assert D2 == D
    HK = H * K

    # Fold sub-heads into one lane-dense RHS: (D, H*K), head-major on lanes.
    w_folded = jnp.transpose(w_stacked, (1, 0, 2)).reshape(D, HK)
    b_folded = b_stacked.reshape(1, HK).astype(jnp.float32)

    # Stream activations / weights in bf16; accumulation & softmax stay f32.
    x_c = x.astype(compute_dtype)
    w_c = w_folded.astype(compute_dtype)

    kernel = functools.partial(_head_kernel, num_sub_heads=H, output_k=K)

    out = pl.pallas_call(
        kernel,
        out_shape=jax.ShapeDtypeStruct((H, B, K), x.dtype),
        grid_spec=pltpu.PrefetchScalarGridSpec(
            num_scalar_prefetch=0,
            grid=(1,),  # single step: whole problem fits VMEM on v5e/v6e/v7x
            in_specs=[
                pl.BlockSpec((B, D), lambda i: (0, 0)),     # x, loaded once
                pl.BlockSpec((D, HK), lambda i: (0, 0)),    # folded W
                pl.BlockSpec((1, HK), lambda i: (0, 0)),    # folded bias
            ],
            out_specs=pl.BlockSpec((H, B, K), lambda i: (0, 0, 0)),
        ),
        compiler_params=pltpu.CompilerParams(
            dimension_semantics=("arbitrary",),
        ),
    )(x_c, w_c, b_folded)

    return out


def make_params(key, num_sub_heads, in_dim, output_k, dtype=jnp.float32):
    """Deterministic synthetic init (PyTorch Linear-style uniform bound)."""
    kw, kb = jax.random.split(key)
    bound = 1.0 / jnp.sqrt(in_dim)
    w = jax.random.uniform(
        kw, (num_sub_heads, in_dim, output_k), dtype, minval=-bound, maxval=bound
    )
    b = jax.random.uniform(
        kb, (num_sub_heads, 1, output_k), dtype, minval=-bound, maxval=bound
    )
    return w, b


if __name__ == "__main__":
    # Module config: input_size=24 -> features_sp_size=3; num_features = cfg[-1][0] = 512
    num_features = 512
    features_sp_size = 3
    in_dim = num_features * features_sp_size * features_sp_size  # 4608
    num_sub_heads = 5
    output_k = 10
    batch = 2  # NOTE: B=2 uses 2/8 sublanes; pad B to 8 upstream if this head
               # ever becomes the dominant workload.

    key = jax.random.PRNGKey(0)
    kx, kp = jax.random.split(key)
    x = jax.random.normal(kx, (batch, in_dim), jnp.float32)
    w, b = make_params(kp, num_sub_heads, in_dim, output_k)

    out = cluster_net6c_head(x, w, b)      # (H, B, K), out[h] == PyTorch list[h]
    out = jax.block_until_ready(out)
    assert out.shape == (num_sub_heads, batch, output_k)

    # Reference checks in plain JAX (Linear + softmax per sub-head).
    x_bf = x.astype(jnp.bfloat16)
    for h in range(num_sub_heads):
        # Same-precision reference (bf16 inputs, f32 accumulation).
        logits_bf = jnp.dot(
            x_bf, w[h].astype(jnp.bfloat16), preferred_element_type=jnp.float32
        ) + b[h, 0]
        ref_bf = jax.nn.softmax(logits_bf, axis=1)
        assert jnp.allclose(out[h], ref_bf, atol=1e-4, rtol=1e-4), f"head {h} mismatch"

        # Full-f32 reference sanity check (bf16 streaming error bound).
        ref_f32 = jax.nn.softmax(x @ w[h] + b[h, 0], axis=1)
        assert jnp.allclose(out[h], ref_f32, atol=2e-2), f"head {h} f32 drift"

        assert out[h].shape == (batch, output_k)

    print("KERNEL_OK")
</pallas_src>

<mosaic_0001>
module attributes {stable_mosaic.version = 11 : i64} {
  func.func @_head_kernel(%arg0: i32, %arg1: memref<2x4608xbf16, #tpu.memory_space<vmem>>, %arg2: memref<4608x50xbf16, #tpu.memory_space<vmem>>, %arg3: memref<1x50xf32, #tpu.memory_space<vmem>>, %arg4: memref<5x2x10xf32, #tpu.memory_space<vmem>>) attributes {dimension_semantics = [#tpu.dimension_semantics<arbitrary>], iteration_bounds = array<i64: 1>, scalar_prefetch = 0 : i64, scratch_operands = 0 : i64, tpu.core_type = #tpu.core_type<tc>, window_params = [{pipeline_mode = #tpu.pipeline_mode<synchronous>, transform_indices = @transform_0, window_bounds = array<i64: 2, 4608>}, {pipeline_mode = #tpu.pipeline_mode<synchronous>, transform_indices = @transform_1, window_bounds = array<i64: 4608, 50>}, {pipeline_mode = #tpu.pipeline_mode<synchronous>, transform_indices = @transform_2, window_bounds = array<i64: 1, 50>}, {pipeline_mode = #tpu.pipeline_mode<synchronous>, transform_indices = @transform_3, window_bounds = array<i64: 5, 2, 10>}]} {
    %c0 = arith.constant 0 : index
    %c0_0 = arith.constant 0 : index
    %0 = vector.load %arg1[%c0, %c0_0] : memref<2x4608xbf16, #tpu.memory_space<vmem>>, vector<2x4608xbf16>
    %c0_1 = arith.constant 0 : index
    %c0_2 = arith.constant 0 : index
    %1 = vector.load %arg2[%c0_1, %c0_2] : memref<4608x50xbf16, #tpu.memory_space<vmem>>, vector<4608x50xbf16>
    %cst = arith.constant dense<0.000000e+00> : vector<2x50xf32>
    %2 = tpu.matmul %0, %1, %cst {dimension_numbers = #tpu.dot_dimension_numbers<[1], [0], [0], [1], [0, 0, 1, 1], [], []>} : vector<2x4608xbf16>, vector<4608x50xbf16>, vector<2x50xf32> -> vector<2x50xf32>
    %c0_3 = arith.constant 0 : index
    %c0_4 = arith.constant 0 : index
    %3 = vector.load %arg3[%c0_3, %c0_4] : memref<1x50xf32, #tpu.memory_space<vmem>>, vector<1x50xf32>
    %4 = vector.broadcast %3 : vector<1x50xf32> to vector<2x50xf32>
    %5 = arith.addf %2, %4 : vector<2x50xf32>
    %6 = vector.extract_strided_slice %5 {offsets = [0, 0], sizes = [2, 10], strides = [1, 1]} : vector<2x50xf32> to vector<2x10xf32>
    %cst_5 = arith.constant dense<0xFF800000> : vector<2xf32>
    %7 = vector.multi_reduction <maximumf>, %6, %cst_5 [1] : vector<2x10xf32> to vector<2xf32>
    %8 = vector.shape_cast %7 : vector<2xf32> to vector<2x1xf32>
    %9 = vector.broadcast %8 : vector<2x1xf32> to vector<2x10xf32>
    %10 = arith.subf %6, %9 : vector<2x10xf32>
    %11 = math.exp %10 : vector<2x10xf32>
    %cst_6 = arith.constant dense<0.000000e+00> : vector<2xf32>
    %12 = vector.multi_reduction <add>, %11, %cst_6 [1] : vector<2x10xf32> to vector<2xf32>
    %13 = vector.shape_cast %12 : vector<2xf32> to vector<2x1xf32>
    %14 = vector.broadcast %13 : vector<2x1xf32> to vector<2x10xf32>
    %15 = arith.divf %11, %14 : vector<2x10xf32>
    %c0_7 = arith.constant 0 : index
    %c0_8 = arith.constant 0 : index
    %c0_9 = arith.constant 0 : index
    %16 = vector.load %arg4[%c0_7, %c0_8, %c0_9] : memref<5x2x10xf32, #tpu.memory_space<vmem>>, vector<1x2x10xf32>
    %17 = vector.shape_cast %16 : vector<1x2x10xf32> to vector<2x10xf32>
    %18 = vector.shape_cast %15 : vector<2x10xf32> to vector<1x2x10xf32>
    tpu.vector_store %arg4[%c0_7, %c0_8, %c0_9], %18 {strides = array<i32>} : memref<5x2x10xf32, #tpu.memory_space<vmem>>, vector<1x2x10xf32>,
    %19 = vector.extract_strided_slice %5 {offsets = [0, 10], sizes = [2, 10], strides = [1, 1]} : vector<2x50xf32> to vector<2x10xf32>
    %cst_10 = arith.constant dense<0xFF800000> : vector<2xf32>
    %20 = vector.multi_reduction <maximumf>, %19, %cst_10 [1] : vector<2x10xf32> to vector<2xf32>
    %21 = vector.shape_cast %20 : vector<2xf32> to vector<2x1xf32>
    %22 = vector.broadcast %21 : vector<2x1xf32> to vector<2x10xf32>
    %23 = arith.subf %19, %22 : vector<2x10xf32>
    %24 = math.exp %23 : vector<2x10xf32>
    %cst_11 = arith.constant dense<0.000000e+00> : vector<2xf32>
    %25 = vector.multi_reduction <add>, %24, %cst_11 [1] : vector<2x10xf32> to vector<2xf32>
    %26 = vector.shape_cast %25 : vector<2xf32> to vector<2x1xf32>
    %27 = vector.broadcast %26 : vector<2x1xf32> to vector<2x10xf32>
    %28 = arith.divf %24, %27 : vector<2x10xf32>
    %c1 = arith.constant 1 : index
    %c0_12 = arith.constant 0 : index
    %c0_13 = arith.constant 0 : index
    %29 = vector.load %arg4[%c1, %c0_12, %c0_13] : memref<5x2x10xf32, #tpu.memory_space<vmem>>, vector<1x2x10xf32>
    %30 = vector.shape_cast %29 : vector<1x2x10xf32> to vector<2x10xf32>
    %31 = vector.shape_cast %28 : vector<2x10xf32> to vector<1x2x10xf32>
    tpu.vector_store %arg4[%c1, %c0_12, %c0_13], %31 {strides = array<i32>} : memref<5x2x10xf32, #tpu.memory_space<vmem>>, vector<1x2x10xf32>,
    %32 = vector.extract_strided_slice %5 {offsets = [0, 20], sizes = [2, 10], strides = [1, 1]} : vector<2x50xf32> to vector<2x10xf32>
    %cst_14 = arith.constant dense<0xFF800000> : vector<2xf32>
    %33 = vector.multi_reduction <maximumf>, %32, %cst_14 [1] : vector<2x10xf32> to vector<2xf32>
    %34 = vector.shape_cast %33 : vector<2xf32> to vector<2x1xf32>
    %35 = vector.broadcast %34 : vector<2x1xf32> to vector<2x10xf32>
    %36 = arith.subf %32, %35 : vector<2x10xf32>
    %37 = math.exp %36 : vector<2x10xf32>
    %cst_15 = arith.constant dense<0.000000e+00> : vector<2xf32>
    %38 = vector.multi_reduction <add>, %37, %cst_15 [1] : vector<2x10xf32> to vector<2xf32>
    %39 = vector.shape_cast %38 : vector<2xf32> to vector<2x1xf32>
    %40 = vector.broadcast %39 : vector<2x1xf32> to vector<2x10xf32>
    %41 = arith.divf %37, %40 : vector<2x10xf32>
    %c2 = arith.constant 2 : index
    %c0_16 = arith.constant 0 : index
    %c0_17 = arith.constant 0 : index
    %42 = vector.load %arg4[%c2, %c0_16, %c0_17] : memref<5x2x10xf32, #tpu.memory_space<vmem>>, vector<1x2x10xf32>
    %43 = vector.shape_cast %42 : vector<1x2x10xf32> to vector<2x10xf32>
    %44 = vector.shape_cast %41 : vector<2x10xf32> to vector<1x2x10xf32>
    tpu.vector_store %arg4[%c2, %c0_16, %c0_17], %44 {strides = array<i32>} : memref<5x2x10xf32, #tpu.memory_space<vmem>>, vector<1x2x10xf32>,
    %45 = vector.extract_strided_slice %5 {offsets = [0, 30], sizes = [2, 10], strides = [1, 1]} : vector<2x50xf32> to vector<2x10xf32>
    %cst_18 = arith.constant dense<0xFF800000> : vector<2xf32>
    %46 = vector.multi_reduction <maximumf>, %45, %cst_18 [1] : vector<2x10xf32> to vector<2xf32>
    %47 = vector.shape_cast %46 : vector<2xf32> to vector<2x1xf32>
    %48 = vector.broadcast %47 : vector<2x1xf32> to vector<2x10xf32>
    %49 = arith.subf %45, %48 : vector<2x10xf32>
    %50 = math.exp %49 : vector<2x10xf32>
    %cst_19 = arith.constant dense<0.000000e+00> : vector<2xf32>
    %51 = vector.multi_reduction <add>, %50, %cst_19 [1] : vector<2x10xf32> to vector<2xf32>
    %52 = vector.shape_cast %51 : vector<2xf32> to vector<2x1xf32>
    %53 = vector.broadcast %52 : vector<2x1xf32> to vector<2x10xf32>
    %54 = arith.divf %50, %53 : vector<2x10xf32>
    %c3 = arith.constant 3 : index
    %c0_20 = arith.constant 0 : index
    %c0_21 = arith.constant 0 : index
    %55 = vector.load %arg4[%c3, %c0_20, %c0_21] : memref<5x2x10xf32, #tpu.memory_space<vmem>>, vector<1x2x10xf32>
    %56 = vector.shape_cast %55 : vector<1x2x10xf32> to vector<2x10xf32>
    %57 = vector.shape_cast %54 : vector<2x10xf32> to vector<1x2x10xf32>
    tpu.vector_store %arg4[%c3, %c0_20, %c0_21], %57 {strides = array<i32>} : memref<5x2x10xf32, #tpu.memory_space<vmem>>, vector<1x2x10xf32>,
    %58 = vector.extract_strided_slice %5 {offsets = [0, 40], sizes = [2, 10], strides = [1, 1]} : vector<2x50xf32> to vector<2x10xf32>
    %cst_22 = arith.constant dense<0xFF800000> : vector<2xf32>
    %59 = vector.multi_reduction <maximumf>, %58, %cst_22 [1] : vector<2x10xf32> to vector<2xf32>
    %60 = vector.shape_cast %59 : vector<2xf32> to vector<2x1xf32>
    %61 = vector.broadcast %60 : vector<2x1xf32> to vector<2x10xf32>
    %62 = arith.subf %58, %61 : vector<2x10xf32>
    %63 = math.exp %62 : vector<2x10xf32>
    %cst_23 = arith.constant dense<0.000000e+00> : vector<2xf32>
    %64 = vector.multi_reduction <add>, %63, %cst_23 [1] : vector<2x10xf32> to vector<2xf32>
    %65 = vector.shape_cast %64 : vector<2xf32> to vector<2x1xf32>
    %66 = vector.broadcast %65 : vector<2x1xf32> to vector<2x10xf32>
    %67 = arith.divf %63, %66 : vector<2x10xf32>
    %c4 = arith.constant 4 : index
    %c0_24 = arith.constant 0 : index
    %c0_25 = arith.constant 0 : index
    %68 = vector.load %arg4[%c4, %c0_24, %c0_25] : memref<5x2x10xf32, #tpu.memory_space<vmem>>, vector<1x2x10xf32>
    %69 = vector.shape_cast %68 : vector<1x2x10xf32> to vector<2x10xf32>
    %70 = vector.shape_cast %67 : vector<2x10xf32> to vector<1x2x10xf32>
    tpu.vector_store %arg4[%c4, %c0_24, %c0_25], %70 {strides = array<i32>} : memref<5x2x10xf32, #tpu.memory_space<vmem>>, vector<1x2x10xf32>,
    return
  }
  func.func @transform_0(%arg0: i32) -> (i32, i32) {
    %c0_i32 = arith.constant 0 : i32
    %c0_i32_0 = arith.constant 0 : i32
    %c0_i32_1 = arith.constant 0 : i32
    return %c0_i32, %c0_i32_0 : i32, i32
  }
  func.func @transform_1(%arg0: i32) -> (i32, i32) {
    %c0_i32 = arith.constant 0 : i32
    %c0_i32_0 = arith.constant 0 : i32
    %c0_i32_1 = arith.constant 0 : i32
    return %c0_i32, %c0_i32_0 : i32, i32
  }
  func.func @transform_2(%arg0: i32) -> (i32, i32) {
    %c0_i32 = arith.constant 0 : i32
    %c0_i32_0 = arith.constant 0 : i32
    %c0_i32_1 = arith.constant 0 : i32
    return %c0_i32, %c0_i32_0 : i32, i32
  }
  func.func @transform_3(%arg0: i32) -> (i32, i32, i32) {
    %c0_i32 = arith.constant 0 : i32
    %c0_i32_0 = arith.constant 0 : i32
    %c0_i32_1 = arith.constant 0 : i32
    %c0_i32_2 = arith.constant 0 : i32
    return %c0_i32, %c0_i32_0, %c0_i32_1 : i32, i32, i32
  }
}

</mosaic_0001>

<bundles_post_ra>
// kernel: tpu_custom_call.1
= control target key start
LH: loop header
LB: loop body
LE: loop exit
PB: predicated region body
PF: predicated region fallthrough
CT: control target
= control target key end

     0   :  { %v613_v28 = vlaneseq  ;;  %v4458_v36 = vmov 1966171168   ;;  %s5444_s0 = inlined_call_operand.vmem [shape: bf16[2,4608], index: 0, kind: input, shape index: {}]   ;;  %s5445_s1 = inlined_call_operand.vmem [shape: bf16[4608,50], index: 1, kind: input, shape index: {}]   ;;  %s5446_s2 = inlined_call_operand.vmem [shape: f32[1,50], index: 2, kind: input, shape index: {}]   ;;  %s5447_s3 = inlined_call_operand.hbm [shape: f32[5,2,10], index: 3, kind: output, shape index: {}]  }
   0x1   :  { %v4124_v0 = vld [vmem:[%s5445_s1 + $0x78] sm:$0xff]   ;;  %v4128_v4 = vld [vmem:[%s5445_s1 + $0x70] sm:$0xff]   ;;  %v4132_v8 = vld [vmem:[%s5445_s1 + $0x68] sm:$0xff]   ;;  %v611_v37 = vunpack.c.l.s4 %v4458_v36 }
   0x2   :  { %v4125_v1 = vld [vmem:[%s5445_s1 + $0xf8] sm:$0xff]   ;;  %3720 = vmatprep.subr.bf16.mxu0 %v4124_v0  ;;  %v4129_v5 = vld [vmem:[%s5445_s1 + $0xf0] sm:$0xff]   ;;  %v4133_v9 = vld [vmem:[%s5445_s1 + $0xe8] sm:$0xff]   ;;  %v614_v33 = vshrl.u32 %v613_v28, 7 }
   0x3   :  { %v4126_v2 = vld [vmem:[%s5445_s1 + $0x38] sm:$0xff]   ;;  %3742 = vmatprep.subr.bf16.mxu1 %v4125_v1  ;;  %v4130_v6 = vld [vmem:[%s5445_s1 + $0x30] sm:$0xff]   ;;  %v4134_v10 = vld [vmem:[%s5445_s1 + $0x28] sm:$0xff]   ;;  %v612_v40 = vunpack.c.0.s8 %v611_v37 }
   0x4   :  { %v4127_v3 = vld [vmem:[%s5445_s1 + $0xb8] sm:$0xff]   ;;  %3721 = vmatpush3.bf16.msra.mxu0 %v4126_v2  ;;  %v4131_v7 = vld [vmem:[%s5445_s1 + $0xb0] sm:$0xff]   ;;  %v4135_v11 = vld [vmem:[%s5445_s1 + $0xa8] sm:$0xff]  }
   0x5   :  { %3743 = vmatpush3.bf16.msra.mxu1 %v4127_v3  ;;  %3722 = vmatprep.subr.bf16.mxu0 %v4128_v4  ;;  %v4136_v12 = vld [vmem:[%s5445_s1 + $0x60] sm:$0xff]   ;;  %v4140_v16 = vld [vmem:[%s5445_s1 + $0x58] sm:$0xff]   ;;  %v4144_v20 = vld [vmem:[%s5445_s1 + $0x50] sm:$0xff]   ;;  %v4591_v41 = vsub.s32 %v612_v40, %v614_v33 }
   0x6   :  { %3744 = vmatprep.subr.bf16.mxu1 %v4129_v5  ;;  %v4137_v13 = vld [vmem:[%s5445_s1 + $0xe0] sm:$0xff]   ;;  %v4141_v17 = vld [vmem:[%s5445_s1 + $0xd8] sm:$0xff]   ;;  %v4145_v21 = vld [vmem:[%s5445_s1 + $0xd0] sm:$0xff]  }
   0x7   :  { %v4138_v14 = vld [vmem:[%s5445_s1 + $0x20] sm:$0xff]   ;;  %v4142_v18 = vld [vmem:[%s5445_s1 + $0x18] sm:$0xff]   ;;  %v4146_v22 = vld [vmem:[%s5445_s1 + $0x10] sm:$0xff]  }
   0x8   :  { %3723 = vmatpush3.bf16.msra.mxu0 %v4130_v6  ;;  %v4139_v15 = vld [vmem:[%s5445_s1 + $0xa0] sm:$0xff]   ;;  %v4143_v19 = vld [vmem:[%s5445_s1 + $0x98] sm:$0xff]   ;;  %v4147_v23 = vld [vmem:[%s5445_s1 + $0x90] sm:$0xff]  }
   0x9   :  { %3745 = vmatpush3.bf16.msra.mxu1 %v4131_v7  ;;  %3724 = vmatprep.subr.bf16.mxu0 %v4132_v8  ;;  %v4148_v24 = vld [vmem:[%s5445_s1 + $0x48] sm:$0xff]   ;;  %v4152_v29 = vld [vmem:[%s5445_s1 + $0x40] sm:$0xff]   ;;  %v4157_v35 = vld [vmem:[%s5445_s1 + $0x178] sm:$0xff]  }
   0xa   :  { %3746 = vmatprep.subr.bf16.mxu1 %v4133_v9  ;;  %v4149_v25 = vld [vmem:[%s5445_s1 + $0xc8] sm:$0xff]   ;;  %v4153_v30 = vld [vmem:[%s5445_s1 + $0xc0] sm:$0xff]   ;;  %v4158_v38 = vld [vmem:[%s5445_s1 + $0x1f8] sm:$0xff]  }
   0xb   :  { %v4150_v26 = vld [vmem:[%s5445_s1 + $0x8] sm:$0xff]   ;;  %v4154_v31 = vld [vmem:[%s5445_s1] sm:$0xff]   ;;  %v4159_v47 = vld [vmem:[%s5445_s1 + $0x138] sm:$0xff]  }
   0xc   :  { %3725 = vmatpush3.bf16.msra.mxu0 %v4134_v10  ;;  %v4151_v27 = vld [vmem:[%s5445_s1 + $0x88] sm:$0xff]   ;;  %v4155_v32 = vld [vmem:[%s5445_s1 + $0x80] sm:$0xff]   ;;  %v4160_v49 = vld [vmem:[%s5445_s1 + $0x1b8] sm:$0xff]  }
   0xd   :  { %3747 = vmatpush3.bf16.msra.mxu1 %v4135_v11  ;;  %3726 = vmatprep.subr.bf16.mxu0 %v4136_v12  ;;  %v16_v34 = vld [vmem:[%s5444_s0] sm:$0xff]  ;;  %v4161_v52 = vld [vmem:[%s5445_s1 + $0x170] sm:$0xff]   ;;  %v4165_v58 = vld [vmem:[%s5445_s1 + $0x168] sm:$0xff]  }
   0xe   :  { %3748 = vmatprep.subr.bf16.mxu1 %v4137_v13  ;;  %v609_v39 = vcombine.high %v16_v34, %v16_v34  ;;  %v616_v42 = vrot.slane %v16_v34, %v4591_v41  ;;  %v4162_v54 = vld [vmem:[%s5445_s1 + $0x1f0] sm:$0xff]   ;;  %v4166_v59 = vld [vmem:[%s5445_s1 + $0x1e8] sm:$0xff]   ;;  %v4169_v62 = vld [vmem:[%s5445_s1 + $0x160] sm:$0xff]  }
   0xf   :  { %v4163_v55 = vld [vmem:[%s5445_s1 + $0x130] sm:$0xff]   ;;  %v4167_v60 = vld [vmem:[%s5445_s1 + $0x128] sm:$0xff]   ;;  %v4170_v63 = vld [vmem:[%s5445_s1 + $0x1e0] sm:$0xff]  }
  0x10   :  { %3727 = vmatpush3.bf16.msra.mxu0 %v4138_v14  ;;  %v4595_v43 = vrot.slane %v609_v39, %v4591_v41  ;;  %v624_v44 = vcombine.high %v616_v42, %v616_v42  ;;  %v632_v45 = vrot.slane %v616_v42, %v4591_v41  ;;  %v4164_v57 = vld [vmem:[%s5445_s1 + $0x1b0] sm:$0xff]   ;;  %v4168_v61 = vld [vmem:[%s5445_s1 + $0x1a8] sm:$0xff]   ;;  %v4171_v0 = vld [vmem:[%s5445_s1 + $0x120] sm:$0xff]  }
  0x11   :  { %3749 = vmatpush3.bf16.msra.mxu1 %v4139_v15  ;;  %3728 = vmatprep.subr.bf16.mxu0 %v4140_v16  ;;  %v4172_v1 = vld [vmem:[%s5445_s1 + $0x1a0] sm:$0xff]   ;;  %v4173_v2 = vld [vmem:[%s5445_s1 + $0x158] sm:$0xff]   ;;  %v4177_v6 = vld [vmem:[%s5445_s1 + $0x150] sm:$0xff]  }
  0x12   :  { %3750 = vmatprep.subr.bf16.mxu1 %v4141_v17  ;;  %v625_v46 = vcombine.high %v4595_v43, %v4595_v43  ;;  %v646_v48 = vrot.slane %v624_v44, %v4591_v41  ;;  %v654_v51 = vcombine.high %v632_v45, %v632_v45  ;;  %v4174_v3 = vld [vmem:[%s5445_s1 + $0x1d8] sm:$0xff]   ;;  %v4178_v7 = vld [vmem:[%s5445_s1 + $0x1d0] sm:$0xff]   ;;  %v4181_v10 = vld [vmem:[%s5445_s1 + $0x148] sm:$0xff]  }
  0x13   :  { %v4175_v4 = vld [vmem:[%s5445_s1 + $0x118] sm:$0xff]   ;;  %v4179_v8 = vld [vmem:[%s5445_s1 + $0x110] sm:$0xff]   ;;  %v4182_v11 = vld [vmem:[%s5445_s1 + $0x1c8] sm:$0xff]  }
  0x14   :  { %3729 = vmatpush3.bf16.msra.mxu0 %v4142_v18  ;;  %v653_v50 = vrot.slane %v625_v46, %v4591_v41  ;;  %2625 = vmatprep.mubr.bf16.mxu0 %v646_v48  ;;  %v656_v53 = vcombine.high %v646_v48, %v646_v48  ;;  %v4176_v5 = vld [vmem:[%s5445_s1 + $0x198] sm:$0xff]   ;;  %v4180_v9 = vld [vmem:[%s5445_s1 + $0x190] sm:$0xff]   ;;  %v4183_v12 = vld [vmem:[%s5445_s1 + $0x108] sm:$0xff]   ;;  %v639_v18 = vrot.slane %v4595_v43, %v4591_v41 }
  0x15   :  { %3751 = vmatpush3.bf16.msra.mxu1 %v4143_v19  ;;  %3730 = vmatprep.subr.bf16.mxu0 %v4144_v20  ;;  %v4184_v13 = vld [vmem:[%s5445_s1 + $0x188] sm:$0xff]   ;;  %v4185_v14 = vld [vmem:[%s5445_s1 + $0x140] sm:$0xff]   ;;  %v4189_v19 = vld [vmem:[%s5445_s1 + $0x278] sm:$0xff]  }
  0x16   :  { %3752 = vmatprep.subr.bf16.mxu1 %v4145_v21  ;;  %v657_v56 = vcombine.high %v653_v50, %v653_v50  ;;  %2665 = vmatprep.mubr.bf16.mxu1 %v656_v53  ;;  %v4186_v15 = vld [vmem:[%s5445_s1 + $0x1c0] sm:$0xff]   ;;  %v4190_v20 = vld [vmem:[%s5445_s1 + $0x2f8] sm:$0xff]   ;;  %v4197_v28 = vld [vmem:[%s5445_s1 + $0x268] sm:$0xff]  }
  0x17   :  { %v4187_v16 = vld [vmem:[%s5445_s1 + $0x100] sm:$0xff]   ;;  %v4191_v21 = vld [vmem:[%s5445_s1 + $0x238] sm:$0xff]   ;;  %v4209_v40 = vld [vmem:[%s5445_s1 + $0x250] sm:$0xff]  }
  0x18   :  { %3731 = vmatpush3.bf16.msra.mxu0 %v4146_v22  ;;  %v4188_v17 = vld [vmem:[%s5445_s1 + $0x180] sm:$0xff]   ;;  %v4192_v22 = vld [vmem:[%s5445_s1 + $0x2b8] sm:$0xff]   ;;  %v4210_v42 = vld [vmem:[%s5445_s1 + $0x2d0] sm:$0xff]  }
  0x19   :  { %3753 = vmatpush3.bf16.msra.mxu1 %v4147_v23  ;;  %3732 = vmatprep.subr.bf16.mxu0 %v4148_v24  ;;  %v655_v23 = vcombine.high %v639_v18, %v639_v18  ;;  %v4193_v24 = vld [vmem:[%s5445_s1 + $0x270] sm:$0xff]   ;;  %v4202_v33 = vld [vmem:[%s5445_s1 + $0x2e0] sm:$0xff]   ;;  %v4205_v36 = vld [vmem:[%s5445_s1 + $0x258] sm:$0xff]  }
  0x1a   :  { %3754 = vmatprep.subr.bf16.mxu1 %v4149_v25  ;;  %v4194_v25 = vld [vmem:[%s5445_s1 + $0x2f0] sm:$0xff]   ;;  %v4203_v34 = vld [vmem:[%s5445_s1 + $0x220] sm:$0xff]   ;;  %v4206_v37 = vld [vmem:[%s5445_s1 + $0x2d8] sm:$0xff]  }
  0x1b   :  { %v4208_v39 = vld [vmem:[%s5445_s1 + $0x298] sm:$0xff]   ;;  %v4211_v43 = vld [vmem:[%s5445_s1 + $0x210] sm:$0xff]   ;;  %v17_v46 = vld [vmem:[%s5444_s0 + $0x8] sm:$0xff] }
  0x1c   :  { %3733 = vmatpush3.bf16.msra.mxu0 %v4150_v26  ;;  %v4195_v26 = vld [vmem:[%s5445_s1 + $0x230] sm:$0xff]   ;;  %v665_v48 = vrot.slane %v17_v46, %v4591_v41 }
  0x1d   :  { %3755 = vmatpush3.bf16.msra.mxu1 %v4151_v27  ;;  %3734 = vmatprep.subr.bf16.mxu0 %v4152_v29  ;;  %v4196_v27 = vld [vmem:[%s5445_s1 + $0x2b0] sm:$0xff]   ;;  %v4198_v29 = vld [vmem:[%s5445_s1 + $0x2e8] sm:$0xff]  }
  0x1e   :  { %3756 = vmatprep.subr.bf16.mxu1 %v4153_v30  ;;  %v4199_v30 = vld [vmem:[%s5445_s1 + $0x228] sm:$0xff]   ;;  %v4212_v44 = vld [vmem:[%s5445_s1 + $0x290] sm:$0xff]  }
  0x20   :  { %3735 = vmatpush3.bf16.msra.mxu0 %v4154_v31  ;;  %v4200_v31 = vld [vmem:[%s5445_s1 + $0x2a8] sm:$0xff]  }
  0x21   :  { %3757 = vmatpush3.bf16.msra.mxu1 %v4155_v32  ;;  %3764 = vmatprep.subr.bf16.mxu0 %v4157_v35  ;;  %v4201_v32 = vld [vmem:[%s5445_s1 + $0x260] sm:$0xff]  }
  0x22   :  { %3786 = vmatprep.subr.bf16.mxu1 %v4158_v38  ;;  %v4204_v35 = vld [vmem:[%s5445_s1 + $0x2a0] sm:$0xff]   ;;  %v4207_v38 = vld [vmem:[%s5445_s1 + $0x218] sm:$0xff]  }
  0x23   :  { %2626 = vmatmul.mubr.bf16.vlgmr.msra.gmra.mxu0 %v632_v45  ;;  %v4213_v45 = vld [vmem:[%s5445_s1 + $0x248] sm:$0xff]  }
  0x24   :  { %3765 = vmatpush3.bf16.msra.mxu0 %v4159_v47  ;;  %2666 = vmatmul.mubr.bf16.vlgmr.msra.gmra.mxu1 %v654_v51  ;;  %v4214_v47 = vld [vmem:[%s5445_s1 + $0x2c8] sm:$0xff]  }
  0x25   :  { %3766 = vmatprep.subr.bf16.mxu0 %v4161_v52  ;;  %3787 = vmatpush3.bf16.msra.mxu1 %v4160_v49  ;;  %v658_v49 = vcombine.high %v17_v46, %v17_v46  ;;  %v4216_v51 = vld [vmem:[%s5445_s1 + $0x288] sm:$0xff]   ;;  %v673_v52 = vcombine.high %v665_v48, %v665_v48 }
  0x26   :  { %2705 = vmatprep.mubr.bf16.mxu0 %v653_v50  ;;  %3788 = vmatprep.subr.bf16.mxu1 %v4162_v54  ;;  %v4215_v50 = vld [vmem:[%s5445_s1 + $0x208] sm:$0xff]   ;;  %v4217_v54 = vld [vmem:[%s5445_s1 + $0x240] sm:$0xff]  }
  0x27   :  { %2745 = vmatprep.mubr.bf16.mxu1 %v657_v56  ;;  %v4783_v53 = vrot.slane %v658_v49, %v4591_v41  ;;  %v695_v56 = vrot.slane %v673_v52, %v4591_v41  ;;  %v4264_v46 = vld [vmem:[%s5445_s1 + $0x428] sm:$0xff]   ;;  %v4267_v49 = vld [vmem:[%s5445_s1 + $0x4e0] sm:$0xff]   ;;  %v4270_v52 = vld [vmem:[%s5445_s1 + $0x458] sm:$0xff]  }
  0x28   :  { %3767 = vmatpush3.bf16.msra.mxu0 %v4163_v55  ;;  %v4218_v55 = vld [vmem:[%s5445_s1 + $0x2c0] sm:$0xff]  }
  0x29   :  { %3768 = vmatprep.subr.bf16.mxu0 %v4165_v58  ;;  %3789 = vmatpush3.bf16.msra.mxu1 %v4164_v57  ;;  %v674_v57 = vcombine.high %v4783_v53, %v4783_v53  ;;  %v4219_v58 = vld [vmem:[%s5445_s1 + $0x200] sm:$0xff]  }
  0x2a   :  { %3790 = vmatprep.subr.bf16.mxu1 %v4166_v59  ;;  %v4220_v59 = vld [vmem:[%s5445_s1 + $0x280] sm:$0xff]  }
  0x2c   :  { %3769 = vmatpush3.bf16.msra.mxu0 %v4167_v60  ;;  %v705_v60 = vcombine.high %v695_v56, %v695_v56 }
  0x2d   :  { %3770 = vmatprep.subr.bf16.mxu0 %v4169_v62  ;;  %3791 = vmatpush3.bf16.msra.mxu1 %v4168_v61  ;;  %v681_v61 = vrot.slane %v665_v48, %v4591_v41  ;;  %v4221_v62 = vld [vmem:[%s5445_s1 + $0x378] sm:$0xff]   ;;  %v4266_v48 = vld [vmem:[%s5445_s1 + $0x460] sm:$0xff]  }
  0x2e   :  { %3792 = vmatprep.subr.bf16.mxu1 %v4170_v63  ;;  %v4222_v63 = vld [vmem:[%s5445_s1 + $0x3f8] sm:$0xff]  }
  0x30   :  { %3771 = vmatpush3.bf16.msra.mxu0 %v4171_v0  ;;  %v702_v0 = vrot.slane %v674_v57, %v4591_v41  ;;  %v4275_v57 = vld [vmem:[%s5445_s1 + $0x4d0] sm:$0xff]  }
  0x31   :  { %3772 = vmatprep.subr.bf16.mxu0 %v4173_v2  ;;  %3793 = vmatpush3.bf16.msra.mxu1 %v4172_v1  ;;  %v4223_v1 = vld [vmem:[%s5445_s1 + $0x338] sm:$0xff]  }
  0x32   :  { %3794 = vmatprep.subr.bf16.mxu1 %v4174_v3  ;;  %v4224_v2 = vld [vmem:[%s5445_s1 + $0x3b8] sm:$0xff]   ;;  %v703_v3 = vcombine.high %v681_v61, %v681_v61 }
  0x34   :  { %3773 = vmatpush3.bf16.msra.mxu0 %v4175_v4  ;;  %v4225_v4 = vld [vmem:[%s5445_s1 + $0x370] sm:$0xff]  }
  0x35   :  { %3774 = vmatprep.subr.bf16.mxu0 %v4177_v6  ;;  %3795 = vmatpush3.bf16.msra.mxu1 %v4176_v5  ;;  %v4226_v5 = vld [vmem:[%s5445_s1 + $0x3f0] sm:$0xff]   ;;  %v706_v6 = vcombine.high %v702_v0, %v702_v0 }
  0x36   :  { %3796 = vmatprep.subr.bf16.mxu1 %v4178_v7  ;;  %v4227_v7 = vld [vmem:[%s5445_s1 + $0x330] sm:$0xff]  }
  0x38   :  { %3775 = vmatpush3.bf16.msra.mxu0 %v4179_v8  ;;  %v4228_v8 = vld [vmem:[%s5445_s1 + $0x3b0] sm:$0xff]  }
  0x39   :  { %3776 = vmatprep.subr.bf16.mxu0 %v4181_v10  ;;  %3797 = vmatpush3.bf16.msra.mxu1 %v4180_v9  ;;  %v4229_v9 = vld [vmem:[%s5445_s1 + $0x368] sm:$0xff]  }
  0x3a   :  { %3798 = vmatprep.subr.bf16.mxu1 %v4182_v11  ;;  %v4230_v10 = vld [vmem:[%s5445_s1 + $0x3e8] sm:$0xff]  }
  0x3b   :  { %v4231_v11 = vld [vmem:[%s5445_s1 + $0x328] sm:$0xff]  }
  0x3c   :  { %3777 = vmatpush3.bf16.msra.mxu0 %v4183_v12  ;;  %v4232_v12 = vld [vmem:[%s5445_s1 + $0x3a8] sm:$0xff]  }
  0x3d   :  { %3778 = vmatprep.subr.bf16.mxu0 %v4185_v14  ;;  %3799 = vmatpush3.bf16.msra.mxu1 %v4184_v13  ;;  %v4233_v13 = vld [vmem:[%s5445_s1 + $0x360] sm:$0xff]  }
  0x3e   :  { %3800 = vmatprep.subr.bf16.mxu1 %v4186_v15  ;;  %v4234_v14 = vld [vmem:[%s5445_s1 + $0x3e0] sm:$0xff]  }
  0x3f   :  { %v4235_v15 = vld [vmem:[%s5445_s1 + $0x320] sm:$0xff]  }
  0x40   :  { %3779 = vmatpush3.bf16.msra.mxu0 %v4187_v16  ;;  %v4236_v16 = vld [vmem:[%s5445_s1 + $0x3a0] sm:$0xff]  }
  0x41   :  { %3808 = vmatprep.subr.bf16.mxu0 %v4189_v19  ;;  %3801 = vmatpush3.bf16.msra.mxu1 %v4188_v17  ;;  %v4237_v17 = vld [vmem:[%s5445_s1 + $0x358] sm:$0xff]  }
  0x42   :  { %3830 = vmatprep.subr.bf16.mxu1 %v4190_v20  ;;  %v4239_v19 = vld [vmem:[%s5445_s1 + $0x318] sm:$0xff]  }
  0x43   :  { %2706 = vmatmul.mubr.bf16.vlgmr.msra.gmra.mxu0 %v639_v18  ;;  %v4238_v18 = vld [vmem:[%s5445_s1 + $0x3d8] sm:$0xff]  }
  0x44   :  { %3809 = vmatpush3.bf16.msra.mxu0 %v4191_v21  ;;  %2746 = vmatmul.mubr.bf16.vlgmr.msra.gmra.mxu1 %v655_v23  ;;  %v4240_v20 = vld [vmem:[%s5445_s1 + $0x398] sm:$0xff]   ;;  %v4241_v21 = vld [vmem:[%s5445_s1 + $0x350] sm:$0xff]  }
  0x45   :  { %3810 = vmatprep.subr.bf16.mxu0 %v4193_v24  ;;  %3831 = vmatpush3.bf16.msra.mxu1 %v4192_v22  ;;  %v4242_v22 = vld [vmem:[%s5445_s1 + $0x3d0] sm:$0xff]  }
  0x46   :  { %3832 = vmatprep.subr.bf16.mxu1 %v4194_v25  ;;  %2785 = vmatprep.mubr.bf16.mxu0 %v695_v56  ;;  %v4243_v23 = vld [vmem:[%s5445_s1 + $0x310] sm:$0xff]   ;;  %v4245_v25 = vld [vmem:[%s5445_s1 + $0x348] sm:$0xff]  }
  0x47   :  { %2825 = vmatprep.mubr.bf16.mxu1 %v705_v60  ;;  %v4244_v24 = vld [vmem:[%s5445_s1 + $0x390] sm:$0xff]   ;;  %v4278_v60 = vld [vmem:[%s5445_s1 + $0x448] sm:$0xff]  }
  0x48   :  { %3811 = vmatpush3.bf16.msra.mxu0 %v4195_v26  ;;  %v4246_v26 = vld [vmem:[%s5445_s1 + $0x3c8] sm:$0xff]   ;;  %v4274_v56 = vld [vmem:[%s5445_s1 + $0x450] sm:$0xff]  }
  0x49   :  { %3812 = vmatprep.subr.bf16.mxu0 %v4197_v28  ;;  %3833 = vmatpush3.bf16.msra.mxu1 %v4196_v27  ;;  %v4247_v27 = vld [vmem:[%s5445_s1 + $0x308] sm:$0xff]  }
  0x4a   :  { %3834 = vmatprep.subr.bf16.mxu1 %v4198_v29  ;;  %v4248_v28 = vld [vmem:[%s5445_s1 + $0x388] sm:$0xff]   ;;  %v4249_v29 = vld [vmem:[%s5445_s1 + $0x340] sm:$0xff]  }
  0x4c   :  { %3813 = vmatpush3.bf16.msra.mxu0 %v4199_v30  ;;  %v4250_v30 = vld [vmem:[%s5445_s1 + $0x3c0] sm:$0xff]  }
  0x4d   :  { %3814 = vmatprep.subr.bf16.mxu0 %v4201_v32  ;;  %3835 = vmatpush3.bf16.msra.mxu1 %v4200_v31  ;;  %v4251_v31 = vld [vmem:[%s5445_s1 + $0x300] sm:$0xff]  }
  0x4e   :  { %3836 = vmatprep.subr.bf16.mxu1 %v4202_v33  ;;  %v4252_v32 = vld [vmem:[%s5445_s1 + $0x380] sm:$0xff]   ;;  %v688_v33 = vrot.slane %v4783_v53, %v4591_v41  ;;  %v4271_v53 = vld [vmem:[%s5445_s1 + $0x4d8] sm:$0xff]  }
  0x50   :  { %3815 = vmatpush3.bf16.msra.mxu0 %v4203_v34  ;;  %v4254_v34 = vld [vmem:[%s5445_s1 + $0x478] sm:$0xff]  }
  0x51   :  { %3816 = vmatprep.subr.bf16.mxu0 %v4205_v36  ;;  %3837 = vmatpush3.bf16.msra.mxu1 %v4204_v35  ;;  %v4255_v35 = vld [vmem:[%s5445_s1 + $0x4f8] sm:$0xff]  }
  0x52   :  { %3838 = vmatprep.subr.bf16.mxu1 %v4206_v37  ;;  %v4256_v36 = vld [vmem:[%s5445_s1 + $0x438] sm:$0xff]  }
  0x53   :  { %v4257_v37 = vld [vmem:[%s5445_s1 + $0x4b8] sm:$0xff]  }
  0x54   :  { %3817 = vmatpush3.bf16.msra.mxu0 %v4207_v38  ;;  %v704_v38 = vcombine.high %v688_v33, %v688_v33 }
  0x55   :  { %3818 = vmatprep.subr.bf16.mxu0 %v4209_v40  ;;  %3839 = vmatpush3.bf16.msra.mxu1 %v4208_v39  ;;  %v4258_v39 = vld [vmem:[%s5445_s1 + $0x470] sm:$0xff]  }
  0x56   :  { %3840 = vmatprep.subr.bf16.mxu1 %v4210_v42  ;;  %v4259_v40 = vld [vmem:[%s5445_s1 + $0x4f0] sm:$0xff]  }
  0x57   :  { %v4260_v42 = vld [vmem:[%s5445_s1 + $0x430] sm:$0xff]  }
  0x58   :  { %3819 = vmatpush3.bf16.msra.mxu0 %v4211_v43  ;;  %v4261_v43 = vld [vmem:[%s5445_s1 + $0x4b0] sm:$0xff]  }
  0x59   :  { %3820 = vmatprep.subr.bf16.mxu0 %v4213_v45  ;;  %3841 = vmatpush3.bf16.msra.mxu1 %v4212_v44  ;;  %v4262_v44 = vld [vmem:[%s5445_s1 + $0x468] sm:$0xff]  }
  0x5a   :  { %3842 = vmatprep.subr.bf16.mxu1 %v4214_v47  ;;  %v4263_v45 = vld [vmem:[%s5445_s1 + $0x4e8] sm:$0xff]  }
  0x5b   :  { %v4265_v47 = vld [vmem:[%s5445_s1 + $0x4a8] sm:$0xff]  }
  0x5c   :  { %3821 = vmatpush3.bf16.msra.mxu0 %v4215_v50  ;;  %v4268_v50 = vld [vmem:[%s5445_s1 + $0x420] sm:$0xff]  }
  0x5d   :  { %3822 = vmatprep.subr.bf16.mxu0 %v4217_v54  ;;  %3843 = vmatpush3.bf16.msra.mxu1 %v4216_v51  ;;  %v4269_v51 = vld [vmem:[%s5445_s1 + $0x4a0] sm:$0xff]   ;;  %v4272_v54 = vld [vmem:[%s5445_s1 + $0x418] sm:$0xff]  }
  0x5e   :  { %3844 = vmatprep.subr.bf16.mxu1 %v4218_v55  ;;  %v4273_v55 = vld [vmem:[%s5445_s1 + $0x498] sm:$0xff]  }
  0x60   :  { %3823 = vmatpush3.bf16.msra.mxu0 %v4219_v58  ;;  %v4276_v58 = vld [vmem:[%s5445_s1 + $0x410] sm:$0xff]  }
  0x61   :  { %3852 = vmatprep.subr.bf16.mxu0 %v4221_v62  ;;  %3845 = vmatpush3.bf16.msra.mxu1 %v4220_v59  ;;  %v4277_v59 = vld [vmem:[%s5445_s1 + $0x490] sm:$0xff]   ;;  %v4279_v62 = vld [vmem:[%s5445_s1 + $0x4c8] sm:$0xff]  }
  0x62   :  { %3874 = vmatprep.subr.bf16.mxu1 %v4222_v63 }
  0x63   :  { %2786 = vmatmul.mubr.bf16.vlgmr.msra.gmra.mxu0 %v681_v61  ;;  %v18_v61 = vld [vmem:[%s5444_s0 + $0x10] sm:$0xff] }
  0x64   :  { %3853 = vmatpush3.bf16.msra.mxu0 %v4223_v1  ;;  %2865 = vmatprep.mubr.bf16.mxu0 %v702_v0  ;;  %v714_v63 = vrot.slane %v18_v61, %v4591_v41  ;;  %v707_v0 = vcombine.high %v18_v61, %v18_v61  ;;  %v4280_v1 = vld [vmem:[%s5445_s1 + $0x408] sm:$0xff]  }
  0x65   :  { %2826 = vmatmul.mubr.bf16.vlgmr.msra.gmra.mxu1 %v703_v3  ;;  %3854 = vmatprep.subr.bf16.mxu0 %v4225_v4  ;;  %v4329_v61 = vld [vmem:[%s5445_s1 + $0x628] sm:$0xff]  }
  0x66   :  { %3875 = vmatpush3.bf16.msra.mxu1 %v4224_v2  ;;  %2905 = vmatprep.mubr.bf16.mxu1 %v706_v6  ;;  %v4281_v2 = vld [vmem:[%s5445_s1 + $0x488] sm:$0xff]   ;;  %v722_v3 = vcombine.high %v714_v63, %v714_v63  ;;  %v4989_v4 = vrot.slane %v707_v0, %v4591_v41  ;;  %v4283_v6 = vld [vmem:[%s5445_s1 + $0x4c0] sm:$0xff]  }
  0x67   :  { %3876 = vmatprep.subr.bf16.mxu1 %v4226_v5  ;;  %v4282_v5 = vld [vmem:[%s5445_s1 + $0x440] sm:$0xff]  }
  0x68   :  { %3855 = vmatpush3.bf16.msra.mxu0 %v4227_v7  ;;  %v744_v7 = vrot.slane %v722_v3, %v4591_v41  ;;  %v4332_v0 = vld [vmem:[%s5445_s1 + $0x6e0] sm:$0xff]   ;;  %v4335_v3 = vld [vmem:[%s5445_s1 + $0x658] sm:$0xff]  }
  0x69   :  { %3856 = vmatprep.subr.bf16.mxu0 %v4229_v9  ;;  %v4284_v9 = vld [vmem:[%s5445_s1 + $0x400] sm:$0xff]  }
  0x6a   :  { %3877 = vmatpush3.bf16.msra.mxu1 %v4228_v8  ;;  %v723_v8 = vcombine.high %v4989_v4, %v4989_v4 }
  0x6b   :  { %3878 = vmatprep.subr.bf16.mxu1 %v4230_v10  ;;  %v4285_v10 = vld [vmem:[%s5445_s1 + $0x480] sm:$0xff]  }
  0x6c   :  { %3857 = vmatpush3.bf16.msra.mxu0 %v4231_v11  ;;  %v754_v11 = vcombine.high %v744_v7, %v744_v7 }
  0x6d   :  { %3858 = vmatprep.subr.bf16.mxu0 %v4233_v13  ;;  %v4286_v13 = vld [vmem:[%s5445_s1 + $0x578] sm:$0xff]  }
  0x6e   :  { %3879 = vmatpush3.bf16.msra.mxu1 %v4232_v12  ;;  %v730_v12 = vrot.slane %v714_v63, %v4591_v41  ;;  %v4331_v63 = vld [vmem:[%s5445_s1 + $0x660] sm:$0xff]  }
  0x6f   :  { %3880 = vmatprep.subr.bf16.mxu1 %v4234_v14  ;;  %v4287_v14 = vld [vmem:[%s5445_s1 + $0x5f8] sm:$0xff]  }
  0x70   :  { %3859 = vmatpush3.bf16.msra.mxu0 %v4235_v15  ;;  %v751_v15 = vrot.slane %v723_v8, %v4591_v41  ;;  %v4340_v8 = vld [vmem:[%s5445_s1 + $0x6d0] sm:$0xff]  }
  0x71   :  { %3860 = vmatprep.subr.bf16.mxu0 %v4237_v17  ;;  %v4289_v17 = vld [vmem:[%s5445_s1 + $0x5b8] sm:$0xff]  }
  0x72   :  { %3881 = vmatpush3.bf16.msra.mxu1 %v4236_v16  ;;  %v4288_v16 = vld [vmem:[%s5445_s1 + $0x538] sm:$0xff]  }
  0x73   :  { %3882 = vmatprep.subr.bf16.mxu1 %v4238_v18  ;;  %v752_v18 = vcombine.high %v730_v12, %v730_v12 }
  0x74   :  { %3861 = vmatpush3.bf16.msra.mxu0 %v4239_v19  ;;  %v4290_v19 = vld [vmem:[%s5445_s1 + $0x570] sm:$0xff]  }
  0x75   :  { %3862 = vmatprep.subr.bf16.mxu0 %v4241_v21  ;;  %v755_v21 = vcombine.high %v751_v15, %v751_v15 }
  0x76   :  { %3883 = vmatpush3.bf16.msra.mxu1 %v4240_v20  ;;  %v4291_v20 = vld [vmem:[%s5445_s1 + $0x5f0] sm:$0xff]  }
  0x77   :  { %3884 = vmatprep.subr.bf16.mxu1 %v4242_v22  ;;  %v4292_v22 = vld [vmem:[%s5445_s1 + $0x530] sm:$0xff]  }
  0x78   :  { %3863 = vmatpush3.bf16.msra.mxu0 %v4243_v23  ;;  %v4293_v23 = vld [vmem:[%s5445_s1 + $0x5b0] sm:$0xff]  }
  0x79   :  { %3864 = vmatprep.subr.bf16.mxu0 %v4245_v25  ;;  %v4295_v25 = vld [vmem:[%s5445_s1 + $0x5e8] sm:$0xff]  }
  0x7a   :  { %3885 = vmatpush3.bf16.msra.mxu1 %v4244_v24  ;;  %v4294_v24 = vld [vmem:[%s5445_s1 + $0x568] sm:$0xff]  }
  0x7b   :  { %3886 = vmatprep.subr.bf16.mxu1 %v4246_v26  ;;  %v4296_v26 = vld [vmem:[%s5445_s1 + $0x528] sm:$0xff]  }
  0x7c   :  { %3865 = vmatpush3.bf16.msra.mxu0 %v4247_v27  ;;  %v4297_v27 = vld [vmem:[%s5445_s1 + $0x5a8] sm:$0xff]  }
  0x7d   :  { %3866 = vmatprep.subr.bf16.mxu0 %v4249_v29  ;;  %v4299_v29 = vld [vmem:[%s5445_s1 + $0x5e0] sm:$0xff]  }
  0x7e   :  { %3887 = vmatpush3.bf16.msra.mxu1 %v4248_v28  ;;  %v4298_v28 = vld [vmem:[%s5445_s1 + $0x560] sm:$0xff]  }
  0x7f   :  { %3888 = vmatprep.subr.bf16.mxu1 %v4250_v30  ;;  %v4300_v30 = vld [vmem:[%s5445_s1 + $0x520] sm:$0xff]  }
  0x80   :  { %3867 = vmatpush3.bf16.msra.mxu0 %v4251_v31  ;;  %v4301_v31 = vld [vmem:[%s5445_s1 + $0x5a0] sm:$0xff]  }
  0x81   :  { %3896 = vmatprep.subr.bf16.mxu0 %v4254_v34  ;;  %v4304_v34 = vld [vmem:[%s5445_s1 + $0x518] sm:$0xff]  }
  0x82   :  { %3889 = vmatpush3.bf16.msra.mxu1 %v4252_v32  ;;  %v4302_v32 = vld [vmem:[%s5445_s1 + $0x558] sm:$0xff]  }
  0x83   :  { %2866 = vmatmul.mubr.bf16.vlgmr.msra.gmra.mxu0 %v688_v33  ;;  %3918 = vmatprep.subr.bf16.mxu1 %v4255_v35  ;;  %v4303_v33 = vld [vmem:[%s5445_s1 + $0x5d8] sm:$0xff]  }
  0x84   :  { %3897 = vmatpush3.bf16.msra.mxu0 %v4256_v36  ;;  %2945 = vmatprep.mubr.bf16.mxu0 %v744_v7  ;;  %v4305_v35 = vld [vmem:[%s5445_s1 + $0x598] sm:$0xff]   ;;  %v4306_v36 = vld [vmem:[%s5445_s1 + $0x550] sm:$0xff]  }
  0x85   :  { %2906 = vmatmul.mubr.bf16.vlgmr.msra.gmra.mxu1 %v704_v38  ;;  %3898 = vmatprep.subr.bf16.mxu0 %v4258_v39  ;;  %v4308_v38 = vld [vmem:[%s5445_s1 + $0x510] sm:$0xff]  }
  0x86   :  { %3919 = vmatpush3.bf16.msra.mxu1 %v4257_v37  ;;  %2985 = vmatprep.mubr.bf16.mxu1 %v754_v11  ;;  %v4307_v37 = vld [vmem:[%s5445_s1 + $0x5d0] sm:$0xff]   ;;  %v4343_v11 = vld [vmem:[%s5445_s1 + $0x648] sm:$0xff]  }
  0x87   :  { %3920 = vmatprep.subr.bf16.mxu1 %v4259_v40  ;;  %v4309_v39 = vld [vmem:[%s5445_s1 + $0x590] sm:$0xff]   ;;  %v4310_v40 = vld [vmem:[%s5445_s1 + $0x548] sm:$0xff]  }
  0x88   :  { %3899 = vmatpush3.bf16.msra.mxu0 %v4260_v42  ;;  %v4311_v42 = vld [vmem:[%s5445_s1 + $0x5c8] sm:$0xff]   ;;  %v4339_v7 = vld [vmem:[%s5445_s1 + $0x650] sm:$0xff]  }
  0x89   :  { %3900 = vmatprep.subr.bf16.mxu0 %v4262_v44  ;;  %v4313_v44 = vld [vmem:[%s5445_s1 + $0x588] sm:$0xff]  }
  0x8a   :  { %3921 = vmatpush3.bf16.msra.mxu1 %v4261_v43  ;;  %v4312_v43 = vld [vmem:[%s5445_s1 + $0x508] sm:$0xff]  }
  0x8b   :  { %3922 = vmatprep.subr.bf16.mxu1 %v4263_v45  ;;  %v4314_v45 = vld [vmem:[%s5445_s1 + $0x540] sm:$0xff]  }
  0x8c   :  { %3901 = vmatpush3.bf16.msra.mxu0 %v4264_v46  ;;  %v4315_v46 = vld [vmem:[%s5445_s1 + $0x5c0] sm:$0xff]  }
  0x8d   :  { %3902 = vmatprep.subr.bf16.mxu0 %v4266_v48  ;;  %v4317_v48 = vld [vmem:[%s5445_s1 + $0x580] sm:$0xff]  }
  0x8e   :  { %3923 = vmatpush3.bf16.msra.mxu1 %v4265_v47  ;;  %v4316_v47 = vld [vmem:[%s5445_s1 + $0x500] sm:$0xff]  }
  0x8f   :  { %3924 = vmatprep.subr.bf16.mxu1 %v4267_v49  ;;  %v737_v49 = vrot.slane %v4989_v4, %v4591_v41  ;;  %v4336_v4 = vld [vmem:[%s5445_s1 + $0x6d8] sm:$0xff]  }
  0x90   :  { %3903 = vmatpush3.bf16.msra.mxu0 %v4268_v50  ;;  %v4319_v50 = vld [vmem:[%s5445_s1 + $0x678] sm:$0xff]  }
  0x91   :  { %3904 = vmatprep.subr.bf16.mxu0 %v4270_v52  ;;  %v4321_v52 = vld [vmem:[%s5445_s1 + $0x638] sm:$0xff]  }
  0x92   :  { %3925 = vmatpush3.bf16.msra.mxu1 %v4269_v51  ;;  %v4320_v51 = vld [vmem:[%s5445_s1 + $0x6f8] sm:$0xff]  }
  0x93   :  { %3926 = vmatprep.subr.bf16.mxu1 %v4271_v53  ;;  %v4322_v53 = vld [vmem:[%s5445_s1 + $0x6b8] sm:$0xff]  }
  0x94   :  { %3905 = vmatpush3.bf16.msra.mxu0 %v4272_v54  ;;  %v753_v54 = vcombine.high %v737_v49, %v737_v49 }
  0x95   :  { %3906 = vmatprep.subr.bf16.mxu0 %v4274_v56  ;;  %v4324_v56 = vld [vmem:[%s5445_s1 + $0x6f0] sm:$0xff]  }
  0x96   :  { %3927 = vmatpush3.bf16.msra.mxu1 %v4273_v55  ;;  %v4323_v55 = vld [vmem:[%s5445_s1 + $0x670] sm:$0xff]  }
  0x97   :  { %3928 = vmatprep.subr.bf16.mxu1 %v4275_v57  ;;  %v4325_v57 = vld [vmem:[%s5445_s1 + $0x630] sm:$0xff]  }
  0x98   :  { %3907 = vmatpush3.bf16.msra.mxu0 %v4276_v58  ;;  %v4326_v58 = vld [vmem:[%s5445_s1 + $0x6b0] sm:$0xff]  }
  0x99   :  { %3908 = vmatprep.subr.bf16.mxu0 %v4278_v60  ;;  %v4328_v60 = vld [vmem:[%s5445_s1 + $0x6e8] sm:$0xff]  }
  0x9a   :  { %3929 = vmatpush3.bf16.msra.mxu1 %v4277_v59  ;;  %v4327_v59 = vld [vmem:[%s5445_s1 + $0x668] sm:$0xff]  }
  0x9b   :  { %3930 = vmatprep.subr.bf16.mxu1 %v4279_v62  ;;  %v4330_v62 = vld [vmem:[%s5445_s1 + $0x6a8] sm:$0xff]  }
  0x9c   :  { %3909 = vmatpush3.bf16.msra.mxu0 %v4280_v1  ;;  %v4333_v1 = vld [vmem:[%s5445_s1 + $0x620] sm:$0xff]  }
  0x9d   :  { %3910 = vmatprep.subr.bf16.mxu0 %v4282_v5  ;;  %v4337_v5 = vld [vmem:[%s5445_s1 + $0x618] sm:$0xff]  }
  0x9e   :  { %3931 = vmatpush3.bf16.msra.mxu1 %v4281_v2  ;;  %v4334_v2 = vld [vmem:[%s5445_s1 + $0x6a0] sm:$0xff]  }
  0x9f   :  { %3932 = vmatprep.subr.bf16.mxu1 %v4283_v6  ;;  %v4338_v6 = vld [vmem:[%s5445_s1 + $0x698] sm:$0xff]  }
  0xa0   :  { %3911 = vmatpush3.bf16.msra.mxu0 %v4284_v9  ;;  %v4341_v9 = vld [vmem:[%s5445_s1 + $0x610] sm:$0xff]  }
  0xa1   :  { %3940 = vmatprep.subr.bf16.mxu0 %v4286_v13  ;;  %v4344_v13 = vld [vmem:[%s5445_s1 + $0x6c8] sm:$0xff]  }
  0xa2   :  { %3933 = vmatpush3.bf16.msra.mxu1 %v4285_v10  ;;  %v4342_v10 = vld [vmem:[%s5445_s1 + $0x690] sm:$0xff]  }
  0xa3   :  { %2946 = vmatmul.mubr.bf16.vlgmr.msra.gmra.mxu0 %v730_v12  ;;  %3962 = vmatprep.subr.bf16.mxu1 %v4287_v14  ;;  %v19_v12 = vld [vmem:[%s5444_s0 + $0x18] sm:$0xff] }
  0xa4   :  { %3941 = vmatpush3.bf16.msra.mxu0 %v4288_v16  ;;  %3025 = vmatprep.mubr.bf16.mxu0 %v751_v15  ;;  %v763_v14 = vrot.slane %v19_v12, %v4591_v41  ;;  %v756_v15 = vcombine.high %v19_v12, %v19_v12  ;;  %v4345_v16 = vld [vmem:[%s5445_s1 + $0x608] sm:$0xff]  }
  0xa5   :  { %2986 = vmatmul.mubr.bf16.vlgmr.msra.gmra.mxu1 %v752_v18  ;;  %3942 = vmatprep.subr.bf16.mxu0 %v4290_v19 }
  0xa6   :  { %3963 = vmatpush3.bf16.msra.mxu1 %v4289_v17  ;;  %3065 = vmatprep.mubr.bf16.mxu1 %v755_v21  ;;  %v4347_v17 = vld [vmem:[%s5445_s1 + $0x640] sm:$0xff]   ;;  %v771_v18 = vcombine.high %v763_v14, %v763_v14  ;;  %v5195_v19 = vrot.slane %v756_v15, %v4591_v41  ;;  %v4385_v15 = vld [vmem:[%s5445_s1 + $0x8f8] sm:$0xff]  }
  0xa7   :  { %3964 = vmatprep.subr.bf16.mxu1 %v4291_v20  ;;  %v4346_v20 = vld [vmem:[%s5445_s1 + $0x688] sm:$0xff]   ;;  %v4348_v21 = vld [vmem:[%s5445_s1 + $0x6c0] sm:$0xff]  }
  0xa8   :  { %3943 = vmatpush3.bf16.msra.mxu0 %v4292_v22  ;;  %v793_v22 = vrot.slane %v771_v18, %v4591_v41  ;;  %v786_v12 = vrot.slane %v5195_v19, %v4591_v41  ;;  %v4388_v18 = vld [vmem:[%s5445_s1 + $0x870] sm:$0xff]  }
  0xa9   :  { %3944 = vmatprep.subr.bf16.mxu0 %v4294_v24  ;;  %v4349_v24 = vld [vmem:[%s5445_s1 + $0x600] sm:$0xff]  }
  0xaa   :  { %3965 = vmatpush3.bf16.msra.mxu1 %v4293_v23  ;;  %v772_v23 = vcombine.high %v5195_v19, %v5195_v19  ;;  %v4387_v19 = vld [vmem:[%s5445_s1 + $0x8b8] sm:$0xff]  }
  0xab   :  { %3966 = vmatprep.subr.bf16.mxu1 %v4295_v25  ;;  %v803_v25 = vcombine.high %v793_v22, %v793_v22 }
  0xac   :  { %3945 = vmatpush3.bf16.msra.mxu0 %v4296_v26  ;;  %v779_v26 = vrot.slane %v763_v14, %v4591_v41  ;;  %v4382_v14 = vld [vmem:[%s5445_s1 + $0x780] sm:$0xff]  }
  0xad   :  { %3946 = vmatprep.subr.bf16.mxu0 %v4298_v28  ;;  %v4350_v28 = vld [vmem:[%s5445_s1 + $0x680] sm:$0xff]  }
  0xae   :  { %3967 = vmatpush3.bf16.msra.mxu1 %v4297_v27  ;;  %v4351_v27 = vld [vmem:[%s5445_s1 + $0x778] sm:$0xff]  }
  0xaf   :  { %3968 = vmatprep.subr.bf16.mxu1 %v4299_v29  ;;  %v800_v29 = vrot.slane %v772_v23, %v4591_v41 }
  0xb0   :  { %3947 = vmatpush3.bf16.msra.mxu0 %v4300_v30  ;;  %v4352_v30 = vld [vmem:[%s5445_s1 + $0x7f8] sm:$0xff]  }
  0xb1   :  { %3948 = vmatprep.subr.bf16.mxu0 %v4302_v32  ;;  %v801_v32 = vcombine.high %v779_v26, %v779_v26 }
  0xb2   :  { %3969 = vmatpush3.bf16.msra.mxu1 %v4301_v31  ;;  %v4353_v31 = vld [vmem:[%s5445_s1 + $0x738] sm:$0xff]  }
  0xb3   :  { %3970 = vmatprep.subr.bf16.mxu1 %v4303_v33  ;;  %v4355_v33 = vld [vmem:[%s5445_s1 + $0x770] sm:$0xff]  }
  0xb4   :  { %3949 = vmatpush3.bf16.msra.mxu0 %v4304_v34  ;;  %v4354_v34 = vld [vmem:[%s5445_s1 + $0x7b8] sm:$0xff]  }
  0xb5   :  { %3950 = vmatprep.subr.bf16.mxu0 %v4306_v36 }
  0xb6   :  { %3971 = vmatpush3.bf16.msra.mxu1 %v4305_v35  ;;  %v804_v35 = vcombine.high %v800_v29, %v800_v29 }
  0xb7   :  { %3972 = vmatprep.subr.bf16.mxu1 %v4307_v37  ;;  %v3430_v37 = vld [vmem:[%s5446_s2] ss:$0 sm:$0xff] }
  0xb8   :  { %3951 = vmatpush3.bf16.msra.mxu0 %v4308_v38  ;;  %v4356_v38 = vld [vmem:[%s5445_s1 + $0x7f0] sm:$0xff]  }
  0xb9   :  { %3952 = vmatprep.subr.bf16.mxu0 %v4310_v40 }
  0xba   :  { %3973 = vmatpush3.bf16.msra.mxu1 %v4309_v39  ;;  %v4357_v39 = vld [vmem:[%s5445_s1 + $0x730] sm:$0xff]  }
  0xbb   :  { %3974 = vmatprep.subr.bf16.mxu1 %v4311_v42 }
  0xbc   :  { %3953 = vmatpush3.bf16.msra.mxu0 %v4312_v43  ;;  %v4359_v43 = vld [vmem:[%s5445_s1 + $0x768] sm:$0xff]  }
  0xbd   :  { %3954 = vmatprep.subr.bf16.mxu0 %v4314_v45  ;;  %v4358_v45 = vld [vmem:[%s5445_s1 + $0x7b0] sm:$0xff]  }
  0xbe   :  { %3975 = vmatpush3.bf16.msra.mxu1 %v4313_v44 }
  0xbf   :  { %3976 = vmatprep.subr.bf16.mxu1 %v4315_v46 }
  0xc0   :  { %3955 = vmatpush3.bf16.msra.mxu0 %v4316_v47 }
  0xc1   :  { %3984 = vmatprep.subr.bf16.mxu0 %v4319_v50 }
  0xc2   :  { %3977 = vmatpush3.bf16.msra.mxu1 %v4317_v48  ;;  %v4360_v48 = vld [vmem:[%s5445_s1 + $0x7e8] sm:$0xff]  }
  0xc3   :  { %3026 = vmatmul.mubr.bf16.vlgmr.msra.gmra.mxu0 %v737_v49  ;;  %4006 = vmatprep.subr.bf16.mxu1 %v4320_v51  ;;  %v4361_v51 = vld [vmem:[%s5445_s1 + $0x728] sm:$0xff]  }
  0xc4   :  { %3985 = vmatpush3.bf16.msra.mxu0 %v4321_v52  ;;  %3105 = vmatprep.mubr.bf16.mxu0 %v793_v22  ;;  %v4390_v22 = vld [vmem:[%s5445_s1 + $0x830] sm:$0xff]  }
  0xc5   :  { %3066 = vmatmul.mubr.bf16.vlgmr.msra.gmra.mxu1 %v753_v54  ;;  %3986 = vmatprep.subr.bf16.mxu0 %v4323_v55  ;;  %v4363_v54 = vld [vmem:[%s5445_s1 + $0x760] sm:$0xff]  }
  0xc6   :  { %4007 = vmatpush3.bf16.msra.mxu1 %v4322_v53  ;;  %3145 = vmatprep.mubr.bf16.mxu1 %v803_v25  ;;  %v4392_v25 = vld [vmem:[%s5445_s1 + $0x868] sm:$0xff]  }
  0xc7   :  { %4008 = vmatprep.subr.bf16.mxu1 %v4324_v56  ;;  %v4362_v56 = vld [vmem:[%s5445_s1 + $0x7a8] sm:$0xff]  }
  0xc8   :  { %3987 = vmatpush3.bf16.msra.mxu0 %v4325_v57 }
  0xc9   :  { %3988 = vmatprep.subr.bf16.mxu0 %v4327_v59  ;;  %v4365_v59 = vld [vmem:[%s5445_s1 + $0x720] sm:$0xff]  }
  0xca   :  { %4009 = vmatpush3.bf16.msra.mxu1 %v4326_v58  ;;  %v4364_v58 = vld [vmem:[%s5445_s1 + $0x7e0] sm:$0xff]  }
  0xcb   :  { %4010 = vmatprep.subr.bf16.mxu1 %v4328_v60  ;;  %v4367_v60 = vld [vmem:[%s5445_s1 + $0x758] sm:$0xff]  }
  0xcc   :  { %3989 = vmatpush3.bf16.msra.mxu0 %v4329_v61  ;;  %v4366_v61 = vld [vmem:[%s5445_s1 + $0x7a0] sm:$0xff]  }
  0xcd   :  { %3990 = vmatprep.subr.bf16.mxu0 %v4331_v63  ;;  %v4369_v63 = vld [vmem:[%s5445_s1 + $0x718] sm:$0xff]  }
  0xce   :  { %4011 = vmatpush3.bf16.msra.mxu1 %v4330_v62  ;;  %v4368_v62 = vld [vmem:[%s5445_s1 + $0x7d8] sm:$0xff]  }
  0xcf   :  { %4012 = vmatprep.subr.bf16.mxu1 %v4332_v0  ;;  %v4371_v0 = vld [vmem:[%s5445_s1 + $0x750] sm:$0xff]  }
  0xd0   :  { %3991 = vmatpush3.bf16.msra.mxu0 %v4333_v1  ;;  %v4370_v1 = vld [vmem:[%s5445_s1 + $0x798] sm:$0xff]  }
  0xd1   :  { %3992 = vmatprep.subr.bf16.mxu0 %v4335_v3  ;;  %v4373_v3 = vld [vmem:[%s5445_s1 + $0x710] sm:$0xff]  }
  0xd2   :  { %4013 = vmatpush3.bf16.msra.mxu1 %v4334_v2  ;;  %v4372_v2 = vld [vmem:[%s5445_s1 + $0x7d0] sm:$0xff]  }
  0xd3   :  { %4014 = vmatprep.subr.bf16.mxu1 %v4336_v4  ;;  %v4375_v4 = vld [vmem:[%s5445_s1 + $0x748] sm:$0xff]  }
  0xd4   :  { %3993 = vmatpush3.bf16.msra.mxu0 %v4337_v5  ;;  %v4374_v5 = vld [vmem:[%s5445_s1 + $0x790] sm:$0xff]  }
  0xd5   :  { %3994 = vmatprep.subr.bf16.mxu0 %v4339_v7  ;;  %v4377_v7 = vld [vmem:[%s5445_s1 + $0x708] sm:$0xff]  }
  0xd6   :  { %4015 = vmatpush3.bf16.msra.mxu1 %v4338_v6  ;;  %v4376_v6 = vld [vmem:[%s5445_s1 + $0x7c8] sm:$0xff]  }
  0xd7   :  { %4016 = vmatprep.subr.bf16.mxu1 %v4340_v8  ;;  %v4379_v8 = vld [vmem:[%s5445_s1 + $0x740] sm:$0xff]  }
  0xd8   :  { %3995 = vmatpush3.bf16.msra.mxu0 %v4341_v9  ;;  %v4378_v9 = vld [vmem:[%s5445_s1 + $0x788] sm:$0xff]  }
  0xd9   :  { %3996 = vmatprep.subr.bf16.mxu0 %v4343_v11  ;;  %v4381_v11 = vld [vmem:[%s5445_s1 + $0x700] sm:$0xff]  }
  0xda   :  { %4017 = vmatpush3.bf16.msra.mxu1 %v4342_v10  ;;  %v4380_v10 = vld [vmem:[%s5445_s1 + $0x7c0] sm:$0xff]  }
  0xdb   :  { %4018 = vmatprep.subr.bf16.mxu1 %v4344_v13  ;;  %v4384_v13 = vld [vmem:[%s5445_s1 + $0x878] sm:$0xff]  }
  0xdc   :  { %3997 = vmatpush3.bf16.msra.mxu0 %v4345_v16  ;;  %v4386_v16 = vld [vmem:[%s5445_s1 + $0x838] sm:$0xff]  }
  0xdd   :  { %3998 = vmatprep.subr.bf16.mxu0 %v4347_v17  ;;  %v802_v17 = vcombine.high %v786_v12, %v786_v12 }
  0xde   :  { %4019 = vmatpush3.bf16.msra.mxu1 %v4346_v20 }
  0xdf   :  { %4020 = vmatprep.subr.bf16.mxu1 %v4348_v21  ;;  %v4389_v21 = vld [vmem:[%s5445_s1 + $0x8f0] sm:$0xff]  }
  0xe0   :  { %3999 = vmatpush3.bf16.msra.mxu0 %v4349_v24 }
  0xe1   :  { %4028 = vmatprep.subr.bf16.mxu0 %v4351_v27  ;;  %v4391_v27 = vld [vmem:[%s5445_s1 + $0x8b0] sm:$0xff]  }
  0xe2   :  { %4021 = vmatpush3.bf16.msra.mxu1 %v4350_v28 }
  0xe3   :  { %v3736_v36 = vpop.f32.mrf.mxu0  ;;  %3106 = vmatmul.mubr.bf16.vlgmr.msra.gmra.mxu0 %v779_v26  ;;  %4050 = vmatprep.subr.bf16.mxu1 %v4352_v30  ;;  %v4393_v30 = vld [vmem:[%s5445_s1 + $0x8e8] sm:$0xff]  }
  0xe4   :  { %4029 = vmatpush3.bf16.msra.mxu0 %v4353_v31  ;;  %3185 = vmatprep.mubr.bf16.mxu0 %v800_v29  ;;  %v3758_v40 = vpop.f32.mrf.mxu1 }
  0xe5   :  { %3146 = vmatmul.mubr.bf16.vlgmr.msra.gmra.mxu1 %v801_v32  ;;  %v3737_v42 = vpop.f32.mrf.mxu0  ;;  %4030 = vmatprep.subr.bf16.mxu0 %v4355_v33  ;;  %v4394_v33 = vld [vmem:[%s5445_s1 + $0x828] sm:$0xff]  }
  0xe6   :  { %4051 = vmatpush3.bf16.msra.mxu1 %v4354_v34  ;;  %v3738_v44 = vadd.f32 %v3737_v42, %v3736_v36  ;;  %3225 = vmatprep.mubr.bf16.mxu1 %v804_v35  ;;  %v3759_v46 = vpop.f32.mrf.mxu1  ;;  %v4396_v36 = vld [vmem:[%s5445_s1 + $0x860] sm:$0xff]  }
  0xe7   :  { %v3739_v47 = vpop.f32.mrf.mxu0  ;;  %4052 = vmatprep.subr.bf16.mxu1 %v4356_v38  ;;  %v3760_v50 = vadd.f32 %v3759_v46, %v3758_v40  ;;  %v4395_v38 = vld [vmem:[%s5445_s1 + $0x8a8] sm:$0xff]   ;;  %v4397_v40 = vld [vmem:[%s5445_s1 + $0x8e0] sm:$0xff]   ;;  %v4402_v46 = vld [vmem:[%s5445_s1 + $0x818] sm:$0xff]  }
  0xe8   :  { %v2628_v49 = vadd.f32 %v3738_v44, %v3430_v37  ;;  %4031 = vmatpush3.bf16.msra.mxu0 %v4357_v39  ;;  %v3761_v52 = vpop.f32.mrf.mxu1  ;;  %v4398_v42 = vld [vmem:[%s5445_s1 + $0x820] sm:$0xff]   ;;  %v4404_v47 = vld [vmem:[%s5445_s1 + $0x850] sm:$0xff]  }
  0xe9   :  { %v3740_v53 = vpop.f32.mrf.mxu0  ;;  %4032 = vmatprep.subr.bf16.mxu0 %v4359_v43  ;;  %v4400_v43 = vld [vmem:[%s5445_s1 + $0x858] sm:$0xff]   ;;  %v4399_v44 = vld [vmem:[%s5445_s1 + $0x8a0] sm:$0xff]   ;;  %v4407_v52 = vld [vmem:[%s5445_s1 + $0x890] sm:$0xff]  }
  0xea   :  { %v5253_v55 = vadd.f32 %v3760_v50, %v2628_v49  ;;  %4053 = vmatpush3.bf16.msra.mxu1 %v4358_v45  ;;  %v3762_v57 = vpop.f32.mrf.mxu1  ;;  %v4401_v45 = vld [vmem:[%s5445_s1 + $0x8d8] sm:$0xff]   ;;  %v4405_v49 = vld [vmem:[%s5445_s1 + $0x8d0] sm:$0xff]  }
  0xeb   :  { %4054 = vmatprep.subr.bf16.mxu1 %v4360_v48  ;;  %v4403_v48 = vld [vmem:[%s5445_s1 + $0x898] sm:$0xff]   ;;  %v4406_v50 = vld [vmem:[%s5445_s1 + $0x810] sm:$0xff]  }
  0xec   :  { %4033 = vmatpush3.bf16.msra.mxu0 %v4361_v51  ;;  %v4408_v51 = vld [vmem:[%s5445_s1 + $0x848] sm:$0xff]  }
  0xed   :  { %4034 = vmatprep.subr.bf16.mxu0 %v4363_v54 }
  0xee   :  { %4055 = vmatpush3.bf16.msra.mxu1 %v4362_v56 }
  0xef   :  { %4056 = vmatprep.subr.bf16.mxu1 %v4364_v58 }
  0xf0   :  { %4035 = vmatpush3.bf16.msra.mxu0 %v4365_v59 }
  0xf1   :  { %4036 = vmatprep.subr.bf16.mxu0 %v4367_v60 }
  0xf2   :  { %4057 = vmatpush3.bf16.msra.mxu1 %v4366_v61 }
  0xf3   :  { %4058 = vmatprep.subr.bf16.mxu1 %v4368_v62 }
  0xf4   :  { %4037 = vmatpush3.bf16.msra.mxu0 %v4369_v63 }
  0xf5   :  { %4038 = vmatprep.subr.bf16.mxu0 %v4371_v0 }
  0xf6   :  { %4059 = vmatpush3.bf16.msra.mxu1 %v4370_v1 }
  0xf7   :  { %4060 = vmatprep.subr.bf16.mxu1 %v4372_v2 }
  0xf8   :  { %4039 = vmatpush3.bf16.msra.mxu0 %v4373_v3 }
  0xf9   :  { %4040 = vmatprep.subr.bf16.mxu0 %v4375_v4 }
  0xfa   :  { %4061 = vmatpush3.bf16.msra.mxu1 %v4374_v5 }
  0xfb   :  { %4062 = vmatprep.subr.bf16.mxu1 %v4376_v6 }
  0xfc   :  { %4041 = vmatpush3.bf16.msra.mxu0 %v4377_v7 }
  0xfd   :  { %4042 = vmatprep.subr.bf16.mxu0 %v4379_v8 }
  0xfe   :  { %4063 = vmatpush3.bf16.msra.mxu1 %v4378_v9 }
  0xff   :  { %4064 = vmatprep.subr.bf16.mxu1 %v4380_v10 }
 0x100   :  { %4043 = vmatpush3.bf16.msra.mxu0 %v4381_v11 }
 0x101   :  { %4072 = vmatprep.subr.bf16.mxu0 %v4384_v13 }
 0x102   :  { %4065 = vmatpush3.bf16.msra.mxu1 %v4382_v14 }
 0x103   :  { %v3780_v20 = vpop.f32.mrf.mxu0  ;;  %3186 = vmatmul.mubr.bf16.vlgmr.msra.gmra.mxu0 %v786_v12  ;;  %4094 = vmatprep.subr.bf16.mxu1 %v4385_v15 }
 0x104   :  { %4073 = vmatpush3.bf16.msra.mxu0 %v4386_v16  ;;  %v3802_v23 = vpop.f32.mrf.mxu1 }
 0x105   :  { %3226 = vmatmul.mubr.bf16.vlgmr.msra.gmra.mxu1 %v802_v17  ;;  %v3781_v24 = vpop.f32.mrf.mxu0  ;;  %4074 = vmatprep.subr.bf16.mxu0 %v4388_v18 }
 0x106   :  { %4095 = vmatpush3.bf16.msra.mxu1 %v4387_v19  ;;  %v3782_v26 = vadd.f32 %v3781_v24, %v3780_v20  ;;  %v3803_v28 = vpop.f32.mrf.mxu1 }
 0x107   :  { %v3783_v29 = vpop.f32.mrf.mxu0  ;;  %4096 = vmatprep.subr.bf16.mxu1 %v4389_v21  ;;  %v3804_v32 = vadd.f32 %v3803_v28, %v3802_v23 }
 0x108   :  { %v2708_v31 = vadd.f32 %v3782_v26, %v5253_v55  ;;  %4075 = vmatpush3.bf16.msra.mxu0 %v4390_v22  ;;  %v3805_v34 = vpop.f32.mrf.mxu1 }
 0x109   :  { %v3784_v35 = vpop.f32.mrf.mxu0  ;;  %4076 = vmatprep.subr.bf16.mxu0 %v4392_v25 }
 0x10a   :  { %v5354_v37 = vadd.f32 %v3804_v32, %v2708_v31  ;;  %4097 = vmatpush3.bf16.msra.mxu1 %v4391_v27  ;;  %v3806_v39 = vpop.f32.mrf.mxu1 }
 0x10b   :  { %4098 = vmatprep.subr.bf16.mxu1 %v4393_v30 }
 0x10c   :  { %4077 = vmatpush3.bf16.msra.mxu0 %v4394_v33 }
 0x10d   :  { %4078 = vmatprep.subr.bf16.mxu0 %v4396_v36 }
 0x10e   :  { %4099 = vmatpush3.bf16.msra.mxu1 %v4395_v38 }
 0x10f   :  { %4100 = vmatprep.subr.bf16.mxu1 %v4397_v40 }
 0x110   :  { %4079 = vmatpush3.bf16.msra.mxu0 %v4398_v42 }
 0x111   :  { %4080 = vmatprep.subr.bf16.mxu0 %v4400_v43 }
 0x112   :  { %4101 = vmatpush3.bf16.msra.mxu1 %v4399_v44 }
 0x113   :  { %4102 = vmatprep.subr.bf16.mxu1 %v4401_v45 }
 0x114   :  { %4081 = vmatpush3.bf16.msra.mxu0 %v4402_v46 }
 0x115   :  { %4082 = vmatprep.subr.bf16.mxu0 %v4404_v47 }
 0x116   :  { %4103 = vmatpush3.bf16.msra.mxu1 %v4403_v48 }
 0x117   :  { %8 = vsyncpa [#allocation3], 0  ;;  %4104 = vmatprep.subr.bf16.mxu1 %v4405_v49  ;;  %v4409_v53 = vld [vmem:[%s5445_s1 + $0x8c8] sm:$0xff]   ;;  %v4412_v57 = vld [vmem:[%s5445_s1 + $0x840] sm:$0xff]   ;;  %vm3370_vm0 = vcmask 320752   ;;  %vm3326_vm1 = vcmask 156752  }
 0x118   :  { %v3431_v54 = vld.sshfl [vmem:[%s5444_s0 + $0x20] sm:$0x33 pattern:$0x75316420]  ;;  %4083 = vmatpush3.bf16.msra.mxu0 %v4406_v50  ;;  %v4410_v55 = vld [vmem:[%s5445_s1 + $0x808] sm:$0xff]   ;;  %vm3392_vm2 = vcmask 402752  }
 0x119   :  { %v812_v56 = vcombine.high %v3431_v54, %v3431_v54  ;;  %4084 = vmatprep.subr.bf16.mxu0 %v4408_v51  ;;  %v4411_v58 = vld [vmem:[%s5445_s1 + $0x888] sm:$0xff]   ;;  %v4413_v60 = vld [vmem:[%s5445_s1 + $0x8c0] sm:$0xff]   ;;  %v819_v63 = vrot.slane %v3431_v54, %v4591_v41  ;;  %vm3348_vm3 = vcmask 238752   ;;  %s4460_s27 = smov 108   ;;  %s4461_s28 = smov 98   ;;  %vm3313_vm4 = vcmask 74752  }
 0x11a   :  { %4105 = vmatpush3.bf16.msra.mxu1 %v4407_v52  ;;  %v4414_v61 = vld [vmem:[%s5445_s1 + $0x800] sm:$0xff]   ;;  %s4462_s29 = smov 88   ;;  %s4463_s30 = smov [#allocation2]  }
 0x11b   :  { %v826_v59 = vrot.slane %v812_v56, %v4591_v41  ;;  %4106 = vmatprep.subr.bf16.mxu1 %v4409_v53  ;;  %v4415_v0 = vld [vmem:[%s5445_s1 + $0x880] sm:$0xff]   ;;  %v827_v1 = vcombine.high %v819_v63, %v819_v63  ;;  %s4459_s1 = smov 118   ;;  %s3419_s4 = sshll.u32 %s4463_s30, 4  ;;  %s3420_s4 = int_to_ptr.vmem [resolvable:$true] %s3419_s4 }
 0x11c   :  { %4085 = vmatpush3.bf16.msra.mxu0 %v4410_v55  ;;  %s4436_s5 = scalar_lea.vmem %s3420_s4, 160  ;;  %p4441_p1 = scmp.lt.s32.totalorder %s3420_s4, %s3420_s4 }
 0x11d   :  { %3265 = vmatprep.mubr.bf16.mxu0 %v826_v59  ;;  %v828_v62 = vcombine.high %v826_v59, %v826_v59  ;;  %4086 = vmatprep.subr.bf16.mxu0 %v4412_v57  ;;  %p4437_p0 = scmp.ne.s32.totalorder %s3420_s4, %s4436_s5  ;;  %p4442_p2 = scmp.lt.s32.totalorder %s4436_s5, %s4436_s5 }
 0x11e   :  { %4107 = vmatpush3.bf16.msra.mxu1 %v4411_v58 }
 0x11f   :  { %3305 = vmatprep.mubr.bf16.mxu1 %v828_v62  ;;  %4108 = vmatprep.subr.bf16.mxu1 %v4413_v60  ;;  %p4443_p3 = por %p4442_p2, %p4441_p1 }
 0x120   :  { %4087 = vmatpush3.bf16.msra.mxu0 %v4414_v61 }
 0x121   :  { %p4444_p4 = pnand %p4443_p3, %p4437_p0 }
 0x122   :  { %4109 = vmatpush3.bf16.msra.mxu1 %v4415_v0 }
 0x123   :  { %v3824_v2 = vpop.f32.mrf.mxu0  ;;  %3266 = vmatmul.mubr.bf16.vlgmr.msra.gmra.mxu0 %v819_v63 }
 0x125   :  { %v3846_v3 = vpop.f32.mrf.mxu1  ;;  %3306 = vmatmul.mubr.bf16.vlgmr.msra.gmra.mxu1 %v827_v1  ;;  %v3825_v4 = vpop.f32.mrf.mxu0 }
 0x126   :  { %v3826_v5 = vadd.f32 %v3825_v4, %v3824_v2 }
 0x127   :  { %v3847_v6 = vpop.f32.mrf.mxu1  ;;  %v3827_v7 = vpop.f32.mrf.mxu0 }
 0x128   :  { %v2788_v41 = vadd.f32 %v3826_v5, %v5354_v37  ;;  %v3848_v8 = vadd.f32 %v3847_v6, %v3846_v3 }
 0x129   :  { %v3849_v9 = vpop.f32.mrf.mxu1  ;;  %v3828_v10 = vpop.f32.mrf.mxu0 }
 0x12a   :  { %v2828_v11 = vadd.f32 %v3848_v8, %v2788_v41 }
 0x12b   :  { %v3850_v12 = vpop.f32.mrf.mxu1 }
 0x143   :  { %v3868_v13 = vpop.f32.mrf.mxu0 }
 0x145   :  { %v3890_v14 = vpop.f32.mrf.mxu1  ;;  %v3869_v15 = vpop.f32.mrf.mxu0 }
 0x146   :  { %v3870_v16 = vadd.f32 %v3869_v15, %v3868_v13 }
 0x147   :  { %v3891_v17 = vpop.f32.mrf.mxu1  ;;  %v3871_v18 = vpop.f32.mrf.mxu0 }
 0x148   :  { %v2868_v19 = vadd.f32 %v3870_v16, %v2828_v11  ;;  %v3892_v20 = vadd.f32 %v3891_v17, %v3890_v14 }
 0x149   :  { %v3893_v21 = vpop.f32.mrf.mxu1  ;;  %v3872_v22 = vpop.f32.mrf.mxu0 }
 0x14a   :  { %v2908_v23 = vadd.f32 %v3892_v20, %v2868_v19 }
 0x14b   :  { %v3894_v24 = vpop.f32.mrf.mxu1 }
 0x163   :  { %v3912_v25 = vpop.f32.mrf.mxu0 }
 0x165   :  { %v3934_v26 = vpop.f32.mrf.mxu1  ;;  %v3913_v27 = vpop.f32.mrf.mxu0 }
 0x166   :  { %v3914_v28 = vadd.f32 %v3913_v27, %v3912_v25 }
 0x167   :  { %v3935_v29 = vpop.f32.mrf.mxu1  ;;  %v3915_v30 = vpop.f32.mrf.mxu0 }
 0x168   :  { %v2948_v31 = vadd.f32 %v3914_v28, %v2908_v23  ;;  %v3936_v32 = vadd.f32 %v3935_v29, %v3934_v26 }
 0x169   :  { %v3937_v33 = vpop.f32.mrf.mxu1  ;;  %v3916_v34 = vpop.f32.mrf.mxu0 }
 0x16a   :  { %v2988_v35 = vadd.f32 %v3936_v32, %v2948_v31 }
 0x16b   :  { %v3938_v36 = vpop.f32.mrf.mxu1 }
 0x183   :  { %v3956_v37 = vpop.f32.mrf.mxu0 }
 0x185   :  { %v3978_v38 = vpop.f32.mrf.mxu1  ;;  %v3957_v39 = vpop.f32.mrf.mxu0 }
 0x186   :  { %v3958_v40 = vadd.f32 %v3957_v39, %v3956_v37 }
 0x187   :  { %v3979_v42 = vpop.f32.mrf.mxu1  ;;  %v3959_v43 = vpop.f32.mrf.mxu0 }
 0x188   :  { %v3028_v44 = vadd.f32 %v3958_v40, %v2988_v35  ;;  %v3980_v45 = vadd.f32 %v3979_v42, %v3978_v38 }
 0x189   :  { %v3981_v46 = vpop.f32.mrf.mxu1  ;;  %v3960_v47 = vpop.f32.mrf.mxu0 }
 0x18a   :  { %v3068_v48 = vadd.f32 %v3980_v45, %v3028_v44 }
 0x18b   :  { %v3982_v49 = vpop.f32.mrf.mxu1 }
 0x1a3   :  { %v4000_v50 = vpop.f32.mrf.mxu0 }
 0x1a5   :  { %v4022_v51 = vpop.f32.mrf.mxu1  ;;  %v4001_v52 = vpop.f32.mrf.mxu0 }
 0x1a6   :  { %v4002_v2 = vadd.f32 %v4001_v52, %v4000_v50 }
 0x1a7   :  { %v4023_v53 = vpop.f32.mrf.mxu1  ;;  %v4003_v54 = vpop.f32.mrf.mxu0 }
 0x1a8   :  { %v3108_v3 = vadd.f32 %v4002_v2, %v3068_v48  ;;  %v4024_v4 = vadd.f32 %v4023_v53, %v4022_v51 }
 0x1a9   :  { %v4025_v55 = vpop.f32.mrf.mxu1  ;;  %v4004_v56 = vpop.f32.mrf.mxu0 }
 0x1aa   :  { %v3148_v6 = vadd.f32 %v4024_v4, %v3108_v3 }
 0x1ab   :  { %v4026_v57 = vpop.f32.mrf.mxu1 }
 0x1c3   :  { %v4044_v58 = vpop.f32.mrf.mxu0 }
 0x1c5   :  { %v4066_v59 = vpop.f32.mrf.mxu1  ;;  %v4045_v60 = vpop.f32.mrf.mxu0 }
 0x1c6   :  { %v4046_v5 = vadd.f32 %v4045_v60, %v4044_v58 }
 0x1c7   :  { %v4067_v61 = vpop.f32.mrf.mxu1  ;;  %v4047_v62 = vpop.f32.mrf.mxu0 }
 0x1c8   :  { %v3188_v7 = vadd.f32 %v4046_v5, %v3148_v6  ;;  %v4068_v41 = vadd.f32 %v4067_v61, %v4066_v59 }
 0x1c9   :  { %v4069_v63 = vpop.f32.mrf.mxu1  ;;  %v4048_v0 = vpop.f32.mrf.mxu0 }
 0x1ca   :  { %v3228_v11 = vadd.f32 %v4068_v41, %v3188_v7 }
 0x1cb   :  { %v4070_v1 = vpop.f32.mrf.mxu1 }
 0x1e3   :  { %v4088_v8 = vpop.f32.mrf.mxu0 }
 0x1e5   :  { %v4110_v9 = vpop.f32.mrf.mxu1  ;;  %v4089_v10 = vpop.f32.mrf.mxu0 }
 0x1e6   :  { %v4090_v12 = vadd.f32 %v4089_v10, %v4088_v8 }
 0x1e7   :  { %v4111_v13 = vpop.f32.mrf.mxu1  ;;  %v4091_v14 = vpop.f32.mrf.mxu0 }
 0x1e8   :  { %v3268_v15 = vadd.f32 %v4090_v12, %v3228_v11  ;;  %v4112_v16 = vadd.f32 %v4111_v13, %v4110_v9 }
 0x1e9   :  { %v4113_v17 = vpop.f32.mrf.mxu1  ;;  %v4092_v18 = vpop.f32.mrf.mxu0 }
 0x1ea   :  { %v3308_v19 = vadd.f32 %v4112_v16, %v3268_v15 }
 0x1eb   :  { %v4114_v20 = vpop.f32.mrf.mxu1 }
 0x1ec   :  { %v3371_v21 = vsel %vm3370_vm0, %v3308_v19, -inf  ;;  %v3327_v22 = vsel %vm3326_vm1, %v3308_v19, -inf  ;;  %v3393_v23 = vsel %vm3392_vm2, %v3308_v19, -inf  ;;  %v3349_v24 = vsel %vm3348_vm3, %v3308_v19, -inf }
 0x1ed   :  { %3372 = vmax.xlane.f32.xlu1 %v3371_v21  ;;  %3328 = vmax.xlane.f32.xlu0 %v3327_v22  ;;  %v3314_v42 = vsel %vm3313_vm4, %v3308_v19, -inf }
 0x1f1   :  { %3394 = vmax.xlane.f32.xlu1 %v3393_v23  ;;  %3350 = vmax.xlane.f32.xlu0 %v3349_v24 }
 0x276   :  { %v3329_v25 = vpop.xlane.xlu0 %3328  ;;  %v3373_v26 = vpop.xlane.xlu1 %3372 }
 0x277   :  { %v3330_v27 = vsub.f32 %v3308_v19, %v3329_v25  ;;  %v3374_v31 = vsub.f32 %v3308_v19, %v3373_v26 }
 0x279   :  { %v3331_v28 = vmul.f32 1.442695, %v3330_v27  ;;  %v3375_v34 = vmul.f32 1.442695, %v3374_v31 }
 0x27a   :  { %v3351_v29 = vpop.xlane.xlu0 %3350  ;;  %v3395_v32 = vpop.xlane.xlu1 %3394 }
 0x27b   :  { %v3352_v30 = vsub.f32 %v3308_v19, %v3351_v29  ;;  %4416 = vpow2.f32 %v3331_v28  ;;  %v3396_v35 = vsub.f32 %v3308_v19, %v3395_v32 }
 0x27d   :  { %v3353_v33 = vmul.f32 1.442695, %v3352_v30  ;;  %v3397_v36 = vmul.f32 1.442695, %v3396_v35 }
 0x27f   :  { %4418 = vpow2.f32 %v3353_v33 }
 0x280   :  { %4420 = vpow2.f32 %v3375_v34 }
 0x281   :  { %4422 = vpow2.f32 %v3397_v36 }
 0x288   :  { %v4417_v37 = vpop.eup %4416 }
 0x289   :  { %3334 = vrot.lane.b32.xlu0 %v4417_v37, %s4459_s1 }
 0x28c   :  { %v4419_v38 = vpop.eup %4418 }
 0x28d   :  { %3356 = vrot.lane.b32.xlu1 %v4419_v38, %s4460_s27  ;;  %v4421_v39 = vpop.eup %4420 }
 0x28e   :  { %v4423_v40 = vpop.eup %4422 }
 0x291   :  { %3378 = vrot.lane.b32.xlu1 %v4421_v39, %s4461_s28 }
 0x295   :  { %3400 = vrot.lane.b32.xlu1 %v4423_v40, %s4462_s29 }
 0x2a8   :  { %3315 = vmax.xlane.f32.xlu0 %v3314_v42 }
 0x2fb   :  { %v3335_v43 = vpop.permute.xlu0 %3334 }
 0x2fc   :  { %v3337_v44 = vsel %vm3313_vm4, %v3335_v43, 0.0 }
 0x2fd   :  { %3338 = vadd.xlane.f32.xlu0 %v3337_v44 }
 0x2ff   :  { %v3357_v48 = vpop.permute.xlu1 %3356 }
 0x300   :  { %v3359_v52 = vsel %vm3313_vm4, %v3357_v48, 0.0 }
 0x303   :  { %v3379_v51 = vpop.permute.xlu1 %3378 }
 0x304   :  { %v3381_v53 = vsel %vm3313_vm4, %v3379_v51, 0.0 }
 0x307   :  { %v3401_v54 = vpop.permute.xlu1 %3400 }
 0x308   :  { %v3403_v55 = vsel %vm3313_vm4, %v3401_v54, 0.0 }
 0x331   :  { %v3316_v45 = vpop.xlane.xlu0 %3315 }
 0x332   :  { %v3317_v46 = vsub.f32 %v3308_v19, %v3316_v45 }
 0x334   :  { %v3318_v47 = vmul.f32 1.442695, %v3317_v46 }
 0x336   :  { %4424 = vpow2.f32 %v3318_v47 }
 0x343   :  { %v4425_v49 = vpop.eup %4424 }
 0x344   :  { %v3320_v50 = vsel %vm3313_vm4, %v4425_v49, 0.0 }
 0x345   :  { %3321 = vadd.xlane.f32.xlu1 %v3320_v50 }
 0x349   :  { %3360 = vadd.xlane.f32.xlu1 %v3359_v52 }
 0x34d   :  { %3382 = vadd.xlane.f32.xlu1 %v3381_v53 }
 0x351   :  { %3404 = vadd.xlane.f32.xlu1 %v3403_v55 }
 0x386   :  { %v3339_v56 = vpop.xlane.xlu0 %3338 }
 0x387   :  { %4426 = vrcp.f32 %v3339_v56 }
 0x394   :  { %v4427_v57 = vpop.eup %4426 }
 0x395   :  { %v3341_v58 = vmul.f32 %v4427_v57, %v4417_v37 }
 0x397   :  { %3343 = vrot.lane.b32.xlu0 %v3341_v58, %s4459_s1 }
 0x3ce   :  { %v3322_v59 = vpop.xlane.xlu1 %3321 }
 0x3cf   :  { %4428 = vrcp.f32 %v3322_v59 }
 0x3d2   :  { %v3361_v60 = vpop.xlane.xlu1 %3360 }
 0x3d3   :  { %4430 = vrcp.f32 %v3361_v60 }
 0x3d6   :  { %v3383_v61 = vpop.xlane.xlu1 %3382 }
 0x3d7   :  { %4432 = vrcp.f32 %v3383_v61 }
 0x3da   :  { %v3405_v62 = vpop.xlane.xlu1 %3404 }
 0x3db   :  { %4434 = vrcp.f32 %v3405_v62 }
 0x3dc   :  { %v4429_v63 = vpop.eup %4428 }
 0x3dd   :  { %v3324_v0 = vmul.f32 %v4429_v63, %v4425_v49 }
 0x3df   :  { %3325 = vst.msk [vmem:[#allocation2] sm:$0x3] %vm3313_vm4, %v3324_v0 }
 0x3e0   :  { %v4431_v1 = vpop.eup %4430 }
 0x3e1   :  { %v3363_v2 = vmul.f32 %v4431_v1, %v4419_v38 }
 0x3e3   :  { %3365 = vrot.lane.b32.xlu1 %v3363_v2, %s4460_s27 }
 0x3e4   :  { %v4433_v3 = vpop.eup %4432 }
 0x3e5   :  { %v3385_v4 = vmul.f32 %v4433_v3, %v4421_v39 }
 0x3e7   :  { %3387 = vrot.lane.b32.xlu0 %v3385_v4, %s4461_s28 }
 0x3e8   :  { %v4435_v5 = vpop.eup %4434 }
 0x3e9   :  { %v3407_v6 = vmul.f32 %v4435_v5, %v4423_v40 }
 0x3eb   :  { %3409 = vrot.lane.b32.xlu0 %v3407_v6, %s4462_s29 }
 0x409   :  { %v3344_v7 = vpop.permute.xlu0 %3343 }
 0x40a   :  { %3347 = vst.msk [vmem:[#allocation2 + $0x2] sm:$0x3] %vm3313_vm4, %v3344_v7 }
 0x455   :  { %v3366_v41 = vpop.permute.xlu1 %3365 }
 0x456   :  { %3369 = vst.msk [vmem:[#allocation2 + $0x4] sm:$0x3] %vm3313_vm4, %v3366_v41 }
 0x459   :  { %v3388_v8 = vpop.permute.xlu0 %3387 }
 0x45a   :  { %3391 = vst.msk [vmem:[#allocation2 + $0x6] sm:$0x3] %vm3313_vm4, %v3388_v8 }
 0x45d   :  { %v3410_v9 = vpop.permute.xlu0 %3409 }
 0x45e   :  { %3413 = vst.msk [vmem:[#allocation2 + $0x8] sm:$0x3] %vm3313_vm4, %v3410_v9 }
 0x45f   :  { %4447 = shalt.err (!%p4444_p4)
}
 0x460   :  { %s4464_s6 = smov 32   ;;  %s4465_s7 = smov 2  }
 0x461   :  { %3425 = dma.vmem_to_hbm [thread:$0]  %s3420_s4, 160, %s5447_s3, [#allocation3], %s4464_s6, %s4464_s6, %s4465_s7  }
 0x462   :  { %4456 = dma.done.wait [#allocation3], 160  }
 0x463   :  { %4457 = vsyncadd [#allocation3], 4294967136 }
 0x464   :  { %3429 = vsyncpa [#allocation3], 1 }

</bundles_post_ra>
